<compile_context>
chip_gen: v6e
topology: v6e:2x2x1
jax: 0.10.0
libtpu: 0.0.40
codegen_flags: <defaults>
</compile_context>

<pallas_src>
import jax
import jax.numpy as jnp
from jax import lax
from jax.experimental import pallas as pl
from jax.experimental.pallas import tpu as pltpu


_INV_SQRT2 = 0.7071067811865476


def _gelu_exact(x):
    # PyTorch nn.GELU() default = exact erf formulation (computed in f32).
    return 0.5 * x * (1.0 + lax.erf(x * _INV_SQRT2))


def _round_up(a, b):
    return ((a + b - 1) // b) * b


def dino_head_kernel(x_ref, w1_ref, b1_ref, w2_ref, b2_ref, w3_ref, b3_ref,
                     v_ref, inv_vnorm_ref, o_ref, h_ref):
    """Grid = (row tiles i, out_dim tiles j). h_ref is a VMEM scratch holding
    the L2-normalized bottleneck activations for the current row tile."""

    # ---- Stage 1: MLP + L2-normalize, once per row tile (j == 0) ----------
    @pl.when(pl.program_id(1) == 0)
    def _():
        mm_dt = w1_ref.dtype                       # matmul dtype (f32 or bf16)
        x = x_ref[...].astype(mm_dt)

        h = jnp.dot(x, w1_ref[...], preferred_element_type=jnp.float32)
        h = _gelu_exact(h + b1_ref[...])           # bias add + GELU in f32
        h = jnp.dot(h.astype(mm_dt), w2_ref[...],
                    preferred_element_type=jnp.float32)
        h = _gelu_exact(h + b2_ref[...])
        h = jnp.dot(h.astype(mm_dt), w3_ref[...],
                    preferred_element_type=jnp.float32)
        h = h + b3_ref[...]

        # F.normalize(h, dim=-1, p=2) with clamp_min(1e-12):
        # 1/max(||h||, 1e-12) == rsqrt(max(sum(h^2), 1e-24)). rsqrt -> EUP.
        ssq = jnp.sum(h * h, axis=-1, keepdims=True)
        h_ref[...] = h * lax.rsqrt(jnp.maximum(ssq, 1e-24))

    # ---- Stage 2: streamed weight-normed last layer (every i, j) ----------
    # y_tile = (h @ v_tile^T) * inv_vnorm_tile ; contraction over the shared
    # last (bottleneck) dim -> no materialized transpose, pure MXU.
    h = h_ref[...].astype(v_ref.dtype)
    y = lax.dot_general(h, v_ref[...], (((1,), (1,)), ((), ())),
                        preferred_element_type=jnp.float32)
    o_ref[...] = (y * inv_vnorm_ref[...]).astype(o_ref.dtype)


def init_params(key, in_dim, hidden_dim, bottleneck_dim, out_dim):
    """f32 master params mirroring DINOHead.__init__ (Linear weights already
    transposed to [in, out] so the kernel computes x @ W directly; trunc_normal_
    in this module is a plain normal(std=0.02); biases are zero)."""
    k1, k2, k3, k4 = jax.random.split(key, 4)
    std = 0.02
    return {
        "w1": std * jax.random.normal(k1, (in_dim, hidden_dim), jnp.float32),
        "b1": jnp.zeros((1, hidden_dim), jnp.float32),
        "w2": std * jax.random.normal(k2, (hidden_dim, hidden_dim), jnp.float32),
        "b2": jnp.zeros((1, hidden_dim), jnp.float32),
        "w3": std * jax.random.normal(k3, (hidden_dim, bottleneck_dim), jnp.float32),
        "b3": jnp.zeros((1, bottleneck_dim), jnp.float32),
        # last_layer weight_v (pre weight-norm), PyTorch layout [out, bottleneck]:
        "v": std * jax.random.normal(k4, (out_dim, bottleneck_dim), jnp.float32),
    }


def prepare_params(params, matmul_dtype=jnp.float32):
    """Parameter-prep (hoisted out of the per-call hot path): cast the matmul
    operands to the MXU dtype and precompute the weight-norm inverse row norms
    in f32 (weight_g == 1)."""
    v_f32 = params["v"].astype(jnp.float32)
    inv_vnorm = 1.0 / jnp.sqrt(jnp.sum(v_f32 * v_f32, axis=-1))   # [out_dim]
    return {
        "w1": params["w1"].astype(matmul_dtype), "b1": params["b1"].astype(jnp.float32),
        "w2": params["w2"].astype(matmul_dtype), "b2": params["b2"].astype(jnp.float32),
        "w3": params["w3"].astype(matmul_dtype), "b3": params["b3"].astype(jnp.float32),
        "v":  params["v"].astype(matmul_dtype),
        "inv_vnorm": inv_vnorm.reshape(1, -1).astype(jnp.float32),  # [1, out_dim]
    }


def dino_head_forward(x, p, *, tm=128, tn=256):
    """x: [N, in_dim]; p: prepared params (see prepare_params). Returns f32
    [N, out_dim]. tm = rows per grid step, tn = out_dim columns per grid step."""
    n, in_dim = x.shape
    hidden = p["w1"].shape[1]
    bottleneck = p["w3"].shape[1]
    out_dim = p["v"].shape[0]

    # Tile sizes: tm multiple of 8, tn multiple of 128 (lane-dense output).
    tm = min(tm, _round_up(n, 8))
    tn = min(tn, _round_up(out_dim, 128))
    n_pad = _round_up(n, tm)
    out_pad = _round_up(out_dim, tn)

    if n_pad != n:
        x = jnp.pad(x, ((0, n_pad - n), (0, 0)))
    v = p["v"]
    inv_vnorm = p["inv_vnorm"]
    if out_pad != out_dim:
        v = jnp.pad(v, ((0, out_pad - out_dim), (0, 0)))
        inv_vnorm = jnp.pad(inv_vnorm, ((0, 0), (0, out_pad - out_dim)))

    grid = (n_pad // tm, out_pad // tn)

    out = pl.pallas_call(
        dino_head_kernel,
        out_shape=jax.ShapeDtypeStruct((n_pad, out_pad), jnp.float32),
        grid_spec=pltpu.PrefetchScalarGridSpec(
            num_scalar_prefetch=0,
            grid=grid,
            in_specs=[
                pl.BlockSpec((tm, in_dim), lambda i, j: (i, 0)),        # x: row tile
                pl.BlockSpec((in_dim, hidden), lambda i, j: (0, 0)),    # W1 (VMEM-resident)
                pl.BlockSpec((1, hidden), lambda i, j: (0, 0)),         # b1
                pl.BlockSpec((hidden, hidden), lambda i, j: (0, 0)),    # W2
                pl.BlockSpec((1, hidden), lambda i, j: (0, 0)),         # b2
                pl.BlockSpec((hidden, bottleneck), lambda i, j: (0, 0)),  # W3
                pl.BlockSpec((1, bottleneck), lambda i, j: (0, 0)),     # b3
                pl.BlockSpec((tn, bottleneck), lambda i, j: (j, 0)),    # v: streamed out tiles
                pl.BlockSpec((1, tn), lambda i, j: (0, j)),             # 1/||v_row||
            ],
            out_specs=pl.BlockSpec((tm, tn), lambda i, j: (i, j)),
            scratch_shapes=[pltpu.VMEM((tm, bottleneck), jnp.float32)],
        ),
        compiler_params=pltpu.CompilerParams(
            dimension_semantics=("parallel", "arbitrary"),
            vmem_limit_bytes=48 << 20,   # headroom on v7x (64 MiB physical VMEM)
        ),
    )(x, p["w1"], p["b1"], p["w2"], p["b2"], p["w3"], p["b3"], v, inv_vnorm)

    return out[:n, :out_dim]


def dino_head_reference(x, p):
    """Pure-JAX f32 reference matching the PyTorch module."""
    h = jnp.dot(x, p["w1"]) + p["b1"]
    h = _gelu_exact(h)
    h = jnp.dot(h, p["w2"]) + p["b2"]
    h = _gelu_exact(h)
    h = jnp.dot(h, p["w3"]) + p["b3"]
    h = h / jnp.maximum(jnp.linalg.norm(h, axis=-1, keepdims=True), 1e-12)
    w = p["v"] / jnp.linalg.norm(p["v"], axis=-1, keepdims=True)
    return jnp.dot(h, w.T)


if __name__ == "__main__":
    # Small shapes consistent with the module (in -> hidden -> hidden ->
    # bottleneck -> out), sized to exercise a 2x2 grid of (row, out) tiles.
    N, IN_DIM, HIDDEN, BOTTLENECK, OUT_DIM = 256, 256, 256, 128, 512

    key = jax.random.PRNGKey(0)
    kx, kp = jax.random.split(key)
    x = jax.random.normal(kx, (N, IN_DIM), jnp.float32)
    params = init_params(kp, IN_DIM, HIDDEN, BOTTLENECK, OUT_DIM)

    ref = dino_head_reference(x, params)

    # f32 matmul path: strict correctness vs the f32 reference.
    out_f32 = dino_head_forward(x, prepare_params(params, jnp.float32),
                                tm=128, tn=256)
    out_f32 = jax.block_until_ready(out_f32)
    assert out_f32.shape == (N, OUT_DIM)
    assert jnp.allclose(out_f32, ref, atol=1e-4, rtol=1e-4), "f32 mismatch vs reference"

    # bf16 matmul path (v6e/v7x MXU dtype, f32 accumulation): loose check.
    out_bf16 = dino_head_forward(x, prepare_params(params, jnp.bfloat16),
                                 tm=128, tn=256)
    out_bf16 = jax.block_until_ready(out_bf16)
    assert out_bf16.shape == (N, OUT_DIM)
    assert jnp.allclose(out_bf16, ref, atol=1e-1, rtol=1e-1), "bf16 mismatch vs reference"

    print("KERNEL_OK")
</pallas_src>

<mosaic_0001>
module attributes {stable_mosaic.version = 11 : i64} {
  func.func @dino_head_kernel(%arg0: i32, %arg1: i32, %arg2: memref<128x256xf32, #tpu.memory_space<vmem>>, %arg3: memref<256x256xf32, #tpu.memory_space<vmem>>, %arg4: memref<1x256xf32, #tpu.memory_space<vmem>>, %arg5: memref<256x256xf32, #tpu.memory_space<vmem>>, %arg6: memref<1x256xf32, #tpu.memory_space<vmem>>, %arg7: memref<256x128xf32, #tpu.memory_space<vmem>>, %arg8: memref<1x128xf32, #tpu.memory_space<vmem>>, %arg9: memref<256x128xf32, #tpu.memory_space<vmem>>, %arg10: memref<1x256xf32, #tpu.memory_space<vmem>>, %arg11: memref<128x256xf32, #tpu.memory_space<vmem>>, %arg12: memref<128x128xf32, #tpu.memory_space<vmem>>) attributes {dimension_semantics = [#tpu.dimension_semantics<parallel>, #tpu.dimension_semantics<arbitrary>], iteration_bounds = array<i64: 2, 2>, scalar_prefetch = 0 : i64, scratch_operands = 1 : i64, tpu.core_type = #tpu.core_type<tc>, window_params = [{transform_indices = @transform_0, window_bounds = array<i64: 128, 256>}, {pipeline_mode = #tpu.pipeline_mode<synchronous>, transform_indices = @transform_1, window_bounds = array<i64: 256, 256>}, {pipeline_mode = #tpu.pipeline_mode<synchronous>, transform_indices = @transform_2, window_bounds = array<i64: 1, 256>}, {pipeline_mode = #tpu.pipeline_mode<synchronous>, transform_indices = @transform_3, window_bounds = array<i64: 256, 256>}, {pipeline_mode = #tpu.pipeline_mode<synchronous>, transform_indices = @transform_4, window_bounds = array<i64: 1, 256>}, {pipeline_mode = #tpu.pipeline_mode<synchronous>, transform_indices = @transform_5, window_bounds = array<i64: 256, 128>}, {pipeline_mode = #tpu.pipeline_mode<synchronous>, transform_indices = @transform_6, window_bounds = array<i64: 1, 128>}, {transform_indices = @transform_7, window_bounds = array<i64: 256, 128>}, {transform_indices = @transform_8, window_bounds = array<i64: 1, 256>}, {transform_indices = @transform_9, window_bounds = array<i64: 128, 256>}]} {
    %c0_i32 = arith.constant 0 : i32
    %0 = arith.cmpi eq, %arg1, %c0_i32 : i32
    %1 = arith.extui %0 : i1 to i32
    %c0_i32_0 = arith.constant 0 : i32
    %2 = arith.cmpi ne, %1, %c0_i32_0 : i32
    scf.if %2 {
      %c0_8 = arith.constant 0 : index
      %c0_9 = arith.constant 0 : index
      %10 = vector.load %arg2[%c0_8, %c0_9] : memref<128x256xf32, #tpu.memory_space<vmem>>, vector<128x256xf32>
      %c0_10 = arith.constant 0 : index
      %c0_11 = arith.constant 0 : index
      %11 = vector.load %arg3[%c0_10, %c0_11] : memref<256x256xf32, #tpu.memory_space<vmem>>, vector<256x256xf32>
      %cst_12 = arith.constant dense<0.000000e+00> : vector<128x256xf32>
      %12 = tpu.matmul %10, %11, %cst_12 {dimension_numbers = #tpu.dot_dimension_numbers<[1], [0], [0], [1], [0, 0, 1, 1], [], []>} : vector<128x256xf32>, vector<256x256xf32>, vector<128x256xf32> -> vector<128x256xf32>
      %c0_13 = arith.constant 0 : index
      %c0_14 = arith.constant 0 : index
      %13 = vector.load %arg4[%c0_13, %c0_14] : memref<1x256xf32, #tpu.memory_space<vmem>>, vector<1x256xf32>
      %14 = vector.broadcast %13 : vector<1x256xf32> to vector<128x256xf32>
      %15 = arith.addf %12, %14 : vector<128x256xf32>
      %cst_15 = arith.constant 5.000000e-01 : f32
      %16 = vector.broadcast %cst_15 : f32 to vector<128x256xf32>
      %17 = arith.mulf %16, %15 : vector<128x256xf32>
      %cst_16 = arith.constant 0.707106769 : f32
      %18 = vector.broadcast %cst_16 : f32 to vector<128x256xf32>
      %19 = arith.mulf %15, %18 : vector<128x256xf32>
      %20 = math.erf %19 : vector<128x256xf32>
      %cst_17 = arith.constant 1.000000e+00 : f32
      %21 = vector.broadcast %cst_17 : f32 to vector<128x256xf32>
      %22 = arith.addf %21, %20 : vector<128x256xf32>
      %23 = arith.mulf %17, %22 : vector<128x256xf32>
      %c0_18 = arith.constant 0 : index
      %c0_19 = arith.constant 0 : index
      %24 = vector.load %arg5[%c0_18, %c0_19] : memref<256x256xf32, #tpu.memory_space<vmem>>, vector<256x256xf32>
      %cst_20 = arith.constant dense<0.000000e+00> : vector<128x256xf32>
      %25 = tpu.matmul %23, %24, %cst_20 {dimension_numbers = #tpu.dot_dimension_numbers<[1], [0], [0], [1], [0, 0, 1, 1], [], []>} : vector<128x256xf32>, vector<256x256xf32>, vector<128x256xf32> -> vector<128x256xf32>
      %c0_21 = arith.constant 0 : index
      %c0_22 = arith.constant 0 : index
      %26 = vector.load %arg6[%c0_21, %c0_22] : memref<1x256xf32, #tpu.memory_space<vmem>>, vector<1x256xf32>
      %27 = vector.broadcast %26 : vector<1x256xf32> to vector<128x256xf32>
      %28 = arith.addf %25, %27 : vector<128x256xf32>
      %cst_23 = arith.constant 5.000000e-01 : f32
      %29 = vector.broadcast %cst_23 : f32 to vector<128x256xf32>
      %30 = arith.mulf %29, %28 : vector<128x256xf32>
      %cst_24 = arith.constant 0.707106769 : f32
      %31 = vector.broadcast %cst_24 : f32 to vector<128x256xf32>
      %32 = arith.mulf %28, %31 : vector<128x256xf32>
      %33 = math.erf %32 : vector<128x256xf32>
      %cst_25 = arith.constant 1.000000e+00 : f32
      %34 = vector.broadcast %cst_25 : f32 to vector<128x256xf32>
      %35 = arith.addf %34, %33 : vector<128x256xf32>
      %36 = arith.mulf %30, %35 : vector<128x256xf32>
      %c0_26 = arith.constant 0 : index
      %c0_27 = arith.constant 0 : index
      %37 = vector.load %arg7[%c0_26, %c0_27] : memref<256x128xf32, #tpu.memory_space<vmem>>, vector<256x128xf32>
      %cst_28 = arith.constant dense<0.000000e+00> : vector<128x128xf32>
      %38 = tpu.matmul %36, %37, %cst_28 {dimension_numbers = #tpu.dot_dimension_numbers<[1], [0], [0], [1], [0, 0, 1, 1], [], []>} : vector<128x256xf32>, vector<256x128xf32>, vector<128x128xf32> -> vector<128x128xf32>
      %c0_29 = arith.constant 0 : index
      %c0_30 = arith.constant 0 : index
      %39 = vector.load %arg8[%c0_29, %c0_30] : memref<1x128xf32, #tpu.memory_space<vmem>>, vector<1x128xf32>
      %40 = vector.broadcast %39 : vector<1x128xf32> to vector<128x128xf32>
      %41 = arith.addf %38, %40 : vector<128x128xf32>
      %42 = arith.mulf %41, %41 : vector<128x128xf32>
      %cst_31 = arith.constant dense<0.000000e+00> : vector<128xf32>
      %43 = vector.multi_reduction <add>, %42, %cst_31 [1] : vector<128x128xf32> to vector<128xf32>
      %44 = vector.shape_cast %43 : vector<128xf32> to vector<128x1xf32>
      %cst_32 = arith.constant 1.000000e-24 : f32
      %45 = vector.broadcast %cst_32 : f32 to vector<128x1xf32>
      %46 = arith.maximumf %44, %45 : vector<128x1xf32>
      %47 = math.rsqrt %46 : vector<128x1xf32>
      %48 = vector.broadcast %47 : vector<128x1xf32> to vector<128x128xf32>
      %49 = arith.mulf %41, %48 : vector<128x128xf32>
      %c0_33 = arith.constant 0 : index
      %c0_34 = arith.constant 0 : index
      %50 = vector.load %arg12[%c0_33, %c0_34] : memref<128x128xf32, #tpu.memory_space<vmem>>, vector<128x128xf32>
      tpu.vector_store %arg12[%c0_33, %c0_34], %49 {strides = array<i32>} : memref<128x128xf32, #tpu.memory_space<vmem>>, vector<128x128xf32>,
    } else {
    }
    %c0 = arith.constant 0 : index
    %c0_1 = arith.constant 0 : index
    %3 = vector.load %arg12[%c0, %c0_1] : memref<128x128xf32, #tpu.memory_space<vmem>>, vector<128x128xf32>
    %c0_2 = arith.constant 0 : index
    %c0_3 = arith.constant 0 : index
    %4 = vector.load %arg9[%c0_2, %c0_3] : memref<256x128xf32, #tpu.memory_space<vmem>>, vector<256x128xf32>
    %cst = arith.constant dense<0.000000e+00> : vector<128x256xf32>
    %5 = tpu.matmul %3, %4, %cst {dimension_numbers = #tpu.dot_dimension_numbers<[1], [1], [0], [0], [0, 0, 1, 0], [], []>} : vector<128x128xf32>, vector<256x128xf32>, vector<128x256xf32> -> vector<128x256xf32>
    %c0_4 = arith.constant 0 : index
    %c0_5 = arith.constant 0 : index
    %6 = vector.load %arg10[%c0_4, %c0_5] : memref<1x256xf32, #tpu.memory_space<vmem>>, vector<1x256xf32>
    %7 = vector.broadcast %6 : vector<1x256xf32> to vector<128x256xf32>
    %8 = arith.mulf %5, %7 : vector<128x256xf32>
    %c0_6 = arith.constant 0 : index
    %c0_7 = arith.constant 0 : index
    %9 = vector.load %arg11[%c0_6, %c0_7] : memref<128x256xf32, #tpu.memory_space<vmem>>, vector<128x256xf32>
    tpu.vector_store %arg11[%c0_6, %c0_7], %8 {strides = array<i32>} : memref<128x256xf32, #tpu.memory_space<vmem>>, vector<128x256xf32>,
    return
  }
  func.func @transform_0(%arg0: i32, %arg1: i32) -> (i32, i32) {
    %c0_i32 = arith.constant 0 : i32
    %c0_i32_0 = arith.constant 0 : i32
    return %arg0, %c0_i32 : i32, i32
  }
  func.func @transform_1(%arg0: i32, %arg1: i32) -> (i32, i32) {
    %c0_i32 = arith.constant 0 : i32
    %c0_i32_0 = arith.constant 0 : i32
    %c0_i32_1 = arith.constant 0 : i32
    return %c0_i32, %c0_i32_0 : i32, i32
  }
  func.func @transform_2(%arg0: i32, %arg1: i32) -> (i32, i32) {
    %c0_i32 = arith.constant 0 : i32
    %c0_i32_0 = arith.constant 0 : i32
    %c0_i32_1 = arith.constant 0 : i32
    return %c0_i32, %c0_i32_0 : i32, i32
  }
  func.func @transform_3(%arg0: i32, %arg1: i32) -> (i32, i32) {
    %c0_i32 = arith.constant 0 : i32
    %c0_i32_0 = arith.constant 0 : i32
    %c0_i32_1 = arith.constant 0 : i32
    return %c0_i32, %c0_i32_0 : i32, i32
  }
  func.func @transform_4(%arg0: i32, %arg1: i32) -> (i32, i32) {
    %c0_i32 = arith.constant 0 : i32
    %c0_i32_0 = arith.constant 0 : i32
    %c0_i32_1 = arith.constant 0 : i32
    return %c0_i32, %c0_i32_0 : i32, i32
  }
  func.func @transform_5(%arg0: i32, %arg1: i32) -> (i32, i32) {
    %c0_i32 = arith.constant 0 : i32
    %c0_i32_0 = arith.constant 0 : i32
    %c0_i32_1 = arith.constant 0 : i32
    return %c0_i32, %c0_i32_0 : i32, i32
  }
  func.func @transform_6(%arg0: i32, %arg1: i32) -> (i32, i32) {
    %c0_i32 = arith.constant 0 : i32
    %c0_i32_0 = arith.constant 0 : i32
    %c0_i32_1 = arith.constant 0 : i32
    return %c0_i32, %c0_i32_0 : i32, i32
  }
  func.func @transform_7(%arg0: i32, %arg1: i32) -> (i32, i32) {
    %c0_i32 = arith.constant 0 : i32
    %c0_i32_0 = arith.constant 0 : i32
    return %arg1, %c0_i32 : i32, i32
  }
  func.func @transform_8(%arg0: i32, %arg1: i32) -> (i32, i32) {
    %c0_i32 = arith.constant 0 : i32
    %c0_i32_0 = arith.constant 0 : i32
    return %c0_i32, %arg1 : i32, i32
  }
  func.func @transform_9(%arg0: i32, %arg1: i32) -> (i32, i32) {
    %c0_i32 = arith.constant 0 : i32
    return %arg0, %arg1 : i32, i32
  }
}

</mosaic_0001>

<bundles_post_ra>
// kernel: tpu_custom_call.1
= control target key start
LH: loop header
LB: loop body
LE: loop exit
PB: predicated region body
PF: predicated region fallthrough
CT: control target
= control target key end

     0   :  { %s3979_s0 = inlined_call_operand.hbm [shape: f32[256,256], index: 0, kind: input, shape index: {}]   ;;  %s3980_s1 = inlined_call_operand.hbm [shape: f32[256,256], index: 1, kind: input, shape index: {}]   ;;  %s3981_s2 = inlined_call_operand.vmem [shape: f32[1,256], index: 2, kind: input, shape index: {}]   ;;  %s3982_s3 = inlined_call_operand.hbm [shape: f32[256,256], index: 3, kind: input, shape index: {}]   ;;  %s3983_s4 = inlined_call_operand.hbm [shape: f32[1,256], index: 4, kind: input, shape index: {}]   ;;  %s3984_s5 = inlined_call_operand.hbm [shape: f32[256,128], index: 5, kind: input, shape index: {}]   ;;  %s3985_s6 = inlined_call_operand.vmem [shape: f32[1,128], index: 6, kind: input, shape index: {}]   ;;  %s3986_s7 = inlined_call_operand.hbm [shape: f32[512,128], index: 7, kind: input, shape index: {}]   ;;  %s3987_s8 = inlined_call_operand.vmem [shape: f32[1,512], index: 8, kind: input, shape index: {}]   ;;  %s3988_s9 = inlined_call_operand.hbm [shape: f32[256,512], index: 9, kind: output, shape index: {}]  }
   0x1   :  { %4003 = sst [smem:[#allocation25_spill]] %s3979_s0 }
   0x2   :  { %4004 = sst [smem:[#allocation26_spill]] %s3980_s1 }
   0x3   :  { %4005 = sst [smem:[#allocation27_spill]] %s3981_s2 }
   0x4   :  { %4006 = sst [smem:[#allocation28_spill]] %s3982_s3 }
   0x5   :  { %4007 = sst [smem:[#allocation29_spill]] %s3983_s4 }
   0x6   :  { %4008 = sst [smem:[#allocation30_spill]] %s3984_s5 }
   0x7   :  { %4009 = sst [smem:[#allocation31_spill]] %s3985_s6 }
   0x8   :  { %4010 = sst [smem:[#allocation32_spill]] %s3986_s7 }
   0x9   :  { %4011 = sst [smem:[#allocation33_spill]] %s3987_s8 }
   0xa   :  { %4012 = sst [smem:[#allocation34_spill]] %s3988_s9 }
   0xb   :  { %14 = vsyncpa [#allocation4], 0 }
   0xc   :  { %16 = vsyncpa [#allocation4 + $0x1], 0 }
   0xd   :  { %17 = vsyncpa [#allocation7], 0 }
   0xe   :  { %18 = vsyncpa [#allocation10], 0 }
   0xf   :  { %19 = vsyncpa [#allocation13], 0 }
  0x10   :  { %21 = vsyncpa [#allocation13 + $0x1], 0 }
  0x11   :  { %22 = vsyncpa [#allocation5], 0 }
  0x12   :  { %24 = vsyncpa [#allocation5 + $0x1], 0  ;;  %s3036_s30 = smov 0   ;;  %s3038_s10 = smov 0  }
  0x13   :  { %s3040_s11 = smov 0   ;;  %s3042_s12 = smov 0  }
  0x14   :  { %s3044_s13 = smov 0   ;;  %s3046_s14 = smov 0  }
  0x15   :  { %s3048_s15 = smov 0   ;;  %s3050_s16 = smov 0  }
  0x16   :  { %s3052_s17 = smov 0   ;;  %s3054_s18 = smov 0  }
  0x17   :  { %s3056_s19 = smov 0   ;;  %s3058_s20 = smov 0  }
  0x18   :  { %s3060_s21 = smov 0   ;;  %s3062_s22 = smov 0  }
  0x19 LB: > { %4013 = sst [smem:[#allocation20_spill]] %s2954_s18  ;;  %s3989_s23 = sadd.s32 4294967295, %s2970_s22   ;;  %s2970_s22 = sphi %s3062_s22, %s30_s22   ;;  %s2966_s21 = sphi %s3060_s21, %s4055_s21   ;;  %s2962_s20 = sphi %s3058_s20, %s4067_s20   ;;  %s2958_s19 = sphi %s3056_s19, %s4066_s19   ;;  %s2954_s18 = sphi %s3054_s18, %s4065_s18   ;;  %s2950_s17 = sphi %s3052_s17, %s4064_s17   ;;  %s2946_s16 = sphi %s3050_s16, %s4063_s16   ;;  %s2942_s15 = sphi %s3048_s15, %s4062_s15   ;;  %s2938_s14 = sphi %s3046_s14, %s4061_s14   ;;  %s2934_s13 = sphi %s3044_s13, %s4060_s13   ;;  %s2930_s12 = sphi %s3042_s12, %s4059_s12   ;;  %s2926_s11 = sphi %s3040_s11, %s4058_s11   ;;  %s2922_s10 = sphi %s3038_s10, %s4057_s10   ;;  %s2918_s30 = sphi %s3036_s30, %s4056_s30  }
  0x1a   : > { %4014 = sst [smem:[#allocation21_spill]] %s2958_s19  ;;  %p2072_p0 = scmp.ge.s32.totalorder %s2970_s22, 1 }
  0x1b   : > { %4015 = sst [smem:[#allocation22_spill]] %s2966_s21  ;;  %p3110_p1 = scmp.eq.s32.totalorder %s3989_s23, 0 }
  0x1c   : > { %p279_p2 = scmp.lt.s32.totalorder %s2970_s22, 5  ;;  %s2972_s26 = smov [#allocation6]  }
  0x1d   : > { %s291_s27 = sshll.u32 %s2972_s26, 4  ;;  %s2973_s29 = smov [#allocation9]   ;;  %s292_s27 = int_to_ptr.vmem [resolvable:$true] %s291_s27 }
  0x1e   : > { %p3115_p3 = pnand %p2072_p0, %p279_p2  ;;  %s321_s23 = sshll.u32 %s2973_s29, 4  ;;  %s322_s23 = int_to_ptr.vmem [resolvable:$true] %s321_s23 }
  0x1f   : > { %s2974_s9 = smov [#allocation8]   ;;  %s2665_s26 = scalar_lea.vmem %s292_s27, 8192 }
  0x20   : > { %p2337_p4 = pneg %p3115_p3  ;;  %s307_s19 = sshll.u32 %s2974_s9, 4  ;;  %s3127_s19 = int_to_ptr.vmem [resolvable:$true] %s307_s19 }
  0x21   : > { %p2666_p7 = scmp.ne.s32.totalorder %s292_s27, %s2665_s26  ;;  %p2673_p10 = scmp.lt.s32.totalorder %s292_s27, %s292_s27 }
  0x22   : > { %p3123_p5 = pnand %p2337_p4, %p3110_p1  ;;  %p2674_p11 = scmp.lt.s32.totalorder %s2665_s26, %s2665_s26 }
  0x24   : > { %p2656_p6 = pneg %p3123_p5  ;;  %p2675_p12 = por %p2674_p11, %p2673_p10 }
  0x26   : > { %p2668_p8 = pnand %p2666_p7, %p2656_p6 }
  0x28   : > { %p2669_p9 = pneg %p2668_p8 }
  0x2a   : > { %p2676_p13 = pnand %p2675_p12, %p2669_p9 }
  0x2c   : > { %2679 = shalt.err (!%p2676_p13)
}
  0x2d   : > { %s3992_s6 = smov 256   ;;  %s3995_s29 = smov 16  }
  0x2e   : > { %s4019_s1 = sld [smem:[#allocation26_spill]]  ;;  %s2691_s8 = scalar_lea.vmem %s322_s23, 32 }
  0x2f   : > { %p2692_p0 = scmp.ne.s32.totalorder %s322_s23, %s2691_s8  ;;  %p2699_p7 = scmp.lt.s32.totalorder %s322_s23, %s322_s23 }
  0x30   : > { %p2700_p8 = scmp.lt.s32.totalorder %s2691_s8, %s2691_s8 }
  0x31   : > { %p2694_p2 = pnand %p2692_p0, %p2656_p6 }
  0x32   : > { %p2701_p9 = por %p2700_p8, %p2699_p7 }
  0x33   : > { %p2695_p4 = pneg %p2694_p2 }
  0x34   : > { %2340 = dma.hbm_to_vmem [thread:$0]  (!%p3123_p5), %s4019_s1, 8192, %s292_s27, [#allocation7], %s3992_s6, %s3992_s6, %s3995_s29  }
  0x35   : > { %p2702_p10 = pnand %p2701_p9, %p2695_p4 }
  0x37   : > { %2705 = shalt.err (!%p2702_p10)
}
  0x38   : > { %s4020_s4 = sld [smem:[#allocation29_spill]]  ;;  %s2717_s2 = scalar_lea.vmem %s3127_s19, 8192 }
  0x39   : > { %p2718_p11 = scmp.ne.s32.totalorder %s3127_s19, %s2717_s2  ;;  %p2725_p0 = scmp.lt.s32.totalorder %s3127_s19, %s3127_s19 }
  0x3a   : > { %p2726_p2 = scmp.lt.s32.totalorder %s2717_s2, %s2717_s2 }
  0x3b   : > { %p2720_p12 = pnand %p2718_p11, %p2656_p6 }
  0x3c   : > { %p2727_p4 = por %p2726_p2, %p2725_p0 }
  0x3d   : > { %p2721_p13 = pneg %p2720_p12 }
  0x3e   : > { %2346 = dma.hbm_to_vmem [thread:$0]  (!%p3123_p5), %s4020_s4, 32, %s322_s23, [#allocation10]  }
  0x3f   : > { %p2728_p7 = pnand %p2727_p4, %p2721_p13 }
  0x41   : > { %2731 = shalt.err (!%p2728_p7)
}
  0x42   : > { %s4021_s3 = sld [smem:[#allocation28_spill]]  ;;  %s2977_s23 = smov [#allocation11]  }
  0x43   : > { %s331_s27 = sshll.u32 %s2977_s23, 4  ;;  %s332_s27 = int_to_ptr.vmem [resolvable:$true] %s331_s27 }
  0x44   : > { %s2743_s9 = scalar_lea.vmem %s332_s27, 4096  ;;  %p2751_p11 = scmp.lt.s32.totalorder %s332_s27, %s332_s27 }
  0x45   : > { %p2744_p8 = scmp.ne.s32.totalorder %s332_s27, %s2743_s9  ;;  %p2752_p12 = scmp.lt.s32.totalorder %s2743_s9, %s2743_s9 }
  0x47   : > { %p2746_p9 = pnand %p2744_p8, %p2656_p6  ;;  %p2753_p13 = por %p2752_p12, %p2751_p11 }
  0x48   : > { %2343 = dma.hbm_to_vmem [thread:$0]  (!%p3123_p5), %s4021_s3, 8192, %s3127_s19, [#allocation7], %s3992_s6, %s3992_s6, %s3995_s29  }
  0x49   : > { %p2747_p10 = pneg %p2746_p9 }
  0x4b   : > { %p2754_p0 = pnand %p2753_p13, %p2747_p10 }
  0x4d   : > { %2757 = shalt.err (!%p2754_p0)
}
  0x4e   : > { %s3993_s26 = smov 128   ;;  %s3994_s19 = smov 8  }
  0x4f   : > { %s4022_s5 = sld [smem:[#allocation30_spill]]  ;;  %s4023_s18 = sadd.s32 4294967295, %s2970_s22  }
  0x50   : > { %p3179_p6 = scmp.eq.s32.totalorder %s4023_s18, 3  ;;  %p56_p2 = scmp.ne.s32.totalorder %s2950_s17, %s2946_s16 }
  0x51   : > { %p3996_p4 = scmp.eq.s32.totalorder %s2970_s22, 0  ;;  %p62_p7 = scmp.ne.s32.totalorder %s2946_s16, %s2942_s15 }
  0x52   : > { %p3997_p8 = scmp.lt.s32.totalorder %s2970_s22, 4  ;;  %s348_s28 = sand.u32 1, %s2950_s17  }
  0x53   : > { %p58_p9 = por %p3996_p4, %p56_p2  ;;  %p3195_p10 = por %p3110_p1, %p62_p7 }
  0x54   : > { %s2104_s2 = sshll.u32 %s2966_s21, 12  ;;  %s4026_s0 = sld [smem:[#allocation25_spill]] }
  0x55   : > { %2349 = dma.hbm_to_vmem [thread:$0]  (!%p3123_p5), %s4022_s5, 4096, %s332_s27, [#allocation10], %s3993_s26, %s3993_s26, %s3994_s19  }
  0x56   : > { %s2078_s27 = sshll.u32 %s348_s28, 8  ;;  %p3205_p5 = pnand %p3997_p8, %p58_p9 }
  0x57   : > { %s352_s19 = scalar_lea.vmem [#allocation3], %s2078_s27  ;;  %s49_s29 = sadd.s32 1, %s2950_s17 }
  0x58   : > { %s360_s9 = sshll.u32 %s352_s19, 4  ;;  %s349_s1 = scalar_lea.sflag [#allocation4], %s348_s28  ;;  %s361_s9 = int_to_ptr.vmem [resolvable:$true] %s360_s9 }
  0x59   : > { %p2760_p11 = pneg %p3205_p5  ;;  %s2771_s3 = scalar_lea.vmem %s361_s9, 4096 }
  0x5a   : > { %s359_s26 = scalar_lea.hbm %s4026_s0, %s2104_s2  ;;  %p2772_p12 = scmp.ne.s32.totalorder %s361_s9, %s2771_s3 }
  0x5b   : > { %s2980_s4 = smov [#allocation3]  }
  0x5c   : > { %p2774_p13 = pnand %p2772_p12, %p2760_p11  ;;  %s2776_s8 = sshll.u32 %s2980_s4, 4  ;;  %s2777_s8 = int_to_ptr.vmem [resolvable:$false] %s2776_s8 }
  0x5d   : > { %s2778_s27 = scalar_lea.vmem %s2777_s8, 8192  ;;  %p2779_p2 = scmp.lt.s32.totalorder %s361_s9, %s2777_s8 }
  0x5e   : > { %p2775_p0 = pneg %p2774_p13  ;;  %p2780_p7 = scmp.lt.s32.totalorder %s2778_s27, %s2771_s3 }
  0x60   : > { %p2781_p4 = por %p2780_p7, %p2779_p2 }
  0x62   : > { %p2782_p9 = pnand %p2781_p4, %p2775_p0 }
  0x64   : > { %2785 = shalt.err (!%p2782_p9)
}
  0x65   : > { %s4028_s19 = smov 16   ;;  %s4029_s2 = smov 256  }
  0x66   : > { %2353 = dma.hbm_to_vmem [thread:$0]  (!%p3205_p5), %s359_s26, 4096, %s361_s9, %s349_s1, %s4029_s2, %s4029_s2, %s4028_s19  }
  0x67   : > { %s2071_s3 = sadd.s32 4294967294, %s2970_s22   ;;  %s39_s4 = sadd.s32 1, %s2962_s20 }
  0x68   : > { %p40_p4 = scmp.ge.s32.totalorder %s39_s4, 2  ;;  %s201_s28 = sadd.s32 1, %s2938_s14 }
  0x69   : > { %p208_p11 = scmp.ne.s32.totalorder %s2938_s14, %s2934_s13  ;;  %p214_p12 = scmp.ne.s32.totalorder %s2934_s13, %s2930_s12 }
  0x6a   : > { %s4069_s4 = smov (%p40_p4, %s39_s4), 0  ;;  %s4031_s18 = sadd.s32 1, %s2966_s21 }
  0x6b   : > { %4030 = sst [smem:[#allocation23_spill]] %s4069_s4  ;;  %s4071_s18 = smov (!%p40_p4, %s4031_s18), %s2966_s21 }
  0x6c   : > { %s198_s1 = ssub.s32 %s2962_s20, %s4069_s4  ;;  %s255_s26 = sadd.s32 1, %s2926_s11 }
  0x6d   : > { %p44_p5 = scmp.ge.s32.totalorder %s4071_s18, 2  ;;  %p199_p13 = scmp.eq.s32.totalorder %s198_s1, 0 }
  0x6e   : > { %p3234_p0 = por %p214_p12, %p3110_p1  ;;  %p265_p2 = scmp.ne.s32.totalorder %s2926_s11, %s2922_s10 }
  0x6f   : > { %s4073_s18 = smov (%p44_p5, %s4071_s18), 0  ;;  %p271_p12 = scmp.ne.s32.totalorder %s2922_s10, %s2918_s30 }
  0x70   : > { %s4032_s12 = scalar_select %p3234_p0, 1, 0 }
  0x71   : > { %4033 = sst [smem:[#allocation24_spill]] %s4073_s18  ;;  %s46_s15 = ssub.s32 %s2966_s21, %s4073_s18 }
  0x72   : > { %s3243_s9 = scalar_select %p199_p13, %s2938_s14, %s201_s28  }
  0x73   : > { %p3249_p7 = por %p3179_p6, %p265_p2  ;;  %p47_p9 = scmp.eq.s32.totalorder %s46_s15, 0 }
  0x74   : > { %s252_s27 = sor.u32 %s198_s1, %s46_s15  ;;  %p272_p5 = scmp.eq.s32.totalorder %s2071_s3, 3 }
  0x75   : > { %s4034_s8 = scalar_select %p3249_p7, 1, 0 }
  0x76   : > { %p253_p4 = scmp.eq.s32.totalorder %s252_s27, 0  ;;  %s370_s0 = sand.u32 1, %s2938_s14  }
  0x77   : > { %s3258_s19 = scalar_select %p47_p9, %s2950_s17, %s49_s29  }
  0x78   : > { %s3261_s2 = scalar_select %p253_p4, %s2926_s11, %s255_s26  }
  0x79   : > { %p4035_p13 = scmp.eq.s32.totalorder %s2970_s22, 0  ;;  %s2082_s23 = sshll.u32 %s370_s0, 8 }
  0x7a   : > { %p3269_p6 = por %p272_p5, %p271_p12  ;;  %s2105_s5 = sshll.u32 %s2962_s20, 12 }
  0x7b   : > { %p210_p8 = por %p208_p11, %p4035_p13  ;;  %s374_s18 = scalar_lea.vmem [#allocation12], %s2082_s23 }
  0x7c   : > { %s4036_s28 = scalar_select %p3269_p6, 1, 0 }
  0x7d   : > { %s381_s1 = sshll.u32 %s374_s18, 4  ;;  %s4037_s7 = sld [smem:[#allocation32_spill]]  ;;  %s382_s1 = int_to_ptr.vmem [resolvable:$true] %s381_s1 }
  0x7e   : > { %p4038_p2 = scmp.lt.s32.totalorder %s2970_s22, 4  ;;  %s371_s26 = scalar_lea.sflag [#allocation13], %s370_s0 }
  0x7f   : > { %s2799_s4 = scalar_lea.vmem %s382_s1, 4096  ;;  %s2981_s23 = smov [#allocation12]  }
  0x80   : > { %p3279_p9 = pnand %p4038_p2, %p210_p8  ;;  %p2800_p4 = scmp.ne.s32.totalorder %s382_s1, %s2799_s4 }
  0x81   : > { %s2804_s18 = sshll.u32 %s2981_s23, 4  ;;  %s2805_s18 = int_to_ptr.vmem [resolvable:$false] %s2804_s18 }
  0x82   : > { %p2788_p11 = pneg %p3279_p9  ;;  %s2806_s21 = scalar_lea.vmem %s2805_s18, 8192 }
  0x83   : > { %s380_s29 = scalar_lea.hbm %s4037_s7, %s2105_s5  ;;  %p2807_p13 = scmp.lt.s32.totalorder %s382_s1, %s2805_s18 }
  0x84   : > { %p2802_p12 = pnand %p2800_p4, %p2788_p11  ;;  %p2808_p6 = scmp.lt.s32.totalorder %s2806_s21, %s2799_s4 }
  0x86   : > { %p2803_p5 = pneg %p2802_p12  ;;  %p2809_p7 = por %p2808_p6, %p2807_p13 }
  0x88   : > { %p2810_p0 = pnand %p2809_p7, %p2803_p5 }
  0x8a   : > { %2813 = shalt.err (!%p2810_p0)
}
  0x8b   : > { %s4040_s5 = smov 8   ;;  %s4041_s15 = smov 128  }
  0x8c   : > { %2356 = dma.hbm_to_vmem [thread:$0]  (!%p3279_p9), %s380_s29, 4096, %s382_s1, %s371_s26, %s4041_s15, %s4041_s15, %s4040_s5  }
  0x8d   : > { %401 = sbr.rel (%p3115_p3) target bundleno = 1392 (0x570), region = 56  ;;  %s403_s0 = sand.u32 (!%p3115_p3), 1, %s2946_s16  }
  0x8e   : > { %s2086_s27 = sshll.u32 (!%p3115_p3), %s403_s0, 8  ;;  %s404_s23 = scalar_lea.sflag (!%p3115_p3), [#allocation4], %s403_s0 }
  0x8f   : > { %s3293_s7 = scalar_lea.vmem (!%p3115_p3), [#allocation3], %s2086_s27 }
  0x92   : > { %2897 = dma.done.wait (%p3195_p10), %s404_s23, 4096  }
  0x93   : > { %2899 = vsyncadd (%p3195_p10), %s404_s23, 4294963200 }
  0x94   : > { %2901 = dma.done.wait (%p3110_p1), [#allocation7], 16384  }
  0x95   : > { %2903 = vsyncadd (%p3110_p1), [#allocation7], 4294950912 }
  0x96   : > { %2905 = dma.done.wait (%p3110_p1), [#allocation10], 4128  }
  0x97   : > { %2907 = vsyncadd (%p3110_p1), [#allocation10], 4294963168  ;;  %s428_s21 = sand.u32 1, %s2934_s13   ;;  %p4042_p3 = scmp.ne.s32.totalorder %s4032_s12, 0 }
  0x98   : > { %s2091_s25 = sshll.u32 %s428_s21, 8  ;;  %s429_s4 = scalar_lea.sflag [#allocation13], %s428_s21 }
  0x99   : > { %s3308_s1 = scalar_lea.vmem [#allocation12], %s2091_s25 }
  0x9a   : > { %2909 = dma.done.wait (%p4042_p3), %s429_s4, 4096  }
  0x9b   : > { %2911 = vsyncadd (%p4042_p3), %s429_s4, 4294963200  ;;  %s4043_s6 = sld [smem:[#allocation20_spill]]  ;;  %s473_s29 = sand.u32 1, %s2922_s10  }
  0x9c   : > { %s2092_s24 = sshll.u32 %s473_s29, 8  ;;  %s4044_s15 = sld [smem:[#allocation33_spill]] }
  0x9d   : > { %s3328_s12 = scalar_lea.vmem [#allocation14], %s2092_s24 }
  0xa1   : > { %s3316_s3 = sshll.u32 %s4043_s6, 1  ;;  %p2094_p8 = scmp.ne.s32.totalorder %s4043_s6, 0 }
  0xa2   : > { %p479_p1 = scmp.lt.s32.totalorder %s3316_s3, 3  ;;  %s4045_s23 = sld [smem:[#allocation27_spill]] (!%p2094_p8) }
  0xa3   : > { %488 = sbr.rel (%p2094_p8) target bundleno = 1087 (0x43f), region = 84  ;;  %s4046_s4 = sld [smem:[#allocation31_spill]] (!%p2094_p8) }
  0xa4   : > { %s3322_s26 = scalar_select %p479_p1, %s3316_s3, 3 }
  0xa6   : > { %s481_s0 = scalar_lea.vmem %s4044_s15, %s3322_s26 }
  0xa8   : > { %v552_v0 = vld [vmem:[#allocation6 + $0xf8] sm:$0xff]  ;;  %v551_v1 = vld [vmem:[#allocation6 + $0xf0] sm:$0xff]  ;;  %v550_v2 = vld [vmem:[#allocation6 + $0xe8] sm:$0xff] }
  0xa9   : > { %597 = vmatprep.subr.mxu0 %v552_v0  ;;  %v549_v3 = vld [vmem:[#allocation6 + $0xe0] sm:$0xff]  ;;  %v548_v4 = vld [vmem:[#allocation6 + $0xd8] sm:$0xff]  ;;  %v547_v5 = vld [vmem:[#allocation6 + $0xd0] sm:$0xff] }
  0xaa   : > { %598 = vmatpush1.msra.mxu0 %v551_v1  ;;  %v546_v6 = vld [vmem:[#allocation6 + $0xc8] sm:$0xff]  ;;  %v545_v7 = vld [vmem:[#allocation6 + $0xc0] sm:$0xff]  ;;  %v544_v8 = vld [vmem:[#allocation6 + $0xb8] sm:$0xff] }
  0xab   : > { %599 = vmatprep.subr.mxu0 %v550_v2  ;;  %v543_v9 = vld [vmem:[#allocation6 + $0xb0] sm:$0xff]  ;;  %v542_v10 = vld [vmem:[#allocation6 + $0xa8] sm:$0xff]  ;;  %v541_v11 = vld [vmem:[#allocation6 + $0xa0] sm:$0xff] }
  0xac   : > { %600 = vmatpush1.msra.mxu0 %v549_v3  ;;  %v540_v12 = vld [vmem:[#allocation6 + $0x98] sm:$0xff]  ;;  %v539_v13 = vld [vmem:[#allocation6 + $0x90] sm:$0xff]  ;;  %v538_v14 = vld [vmem:[#allocation6 + $0x88] sm:$0xff] }
  0xad   : > { %601 = vmatprep.subr.mxu0 %v548_v4  ;;  %v537_v15 = vld [vmem:[#allocation6 + $0x80] sm:$0xff]  ;;  %v536_v16 = vld [vmem:[#allocation6 + $0x78] sm:$0xff]  ;;  %v535_v17 = vld [vmem:[#allocation6 + $0x70] sm:$0xff] }
  0xae   : > { %602 = vmatpush1.msra.mxu0 %v547_v5  ;;  %v534_v18 = vld [vmem:[#allocation6 + $0x68] sm:$0xff]  ;;  %v533_v19 = vld [vmem:[#allocation6 + $0x60] sm:$0xff]  ;;  %v532_v20 = vld [vmem:[#allocation6 + $0x58] sm:$0xff] }
  0xaf   : > { %603 = vmatprep.subr.mxu0 %v546_v6  ;;  %v531_v21 = vld [vmem:[#allocation6 + $0x50] sm:$0xff]  ;;  %v530_v22 = vld [vmem:[#allocation6 + $0x48] sm:$0xff]  ;;  %v529_v23 = vld [vmem:[#allocation6 + $0x40] sm:$0xff] }
  0xb0   : > { %604 = vmatpush1.msra.mxu0 %v545_v7  ;;  %v490_v24 = vld [vmem:[%s3293_s7 + $0x8] sm:$0xff]  ;;  %v528_v25 = vld [vmem:[#allocation6 + $0x38] sm:$0xff]  ;;  %v527_v26 = vld [vmem:[#allocation6 + $0x30] sm:$0xff] }
  0xb1   : > { %605 = vmatprep.subr.mxu0 %v544_v8  ;;  %661 = vmatprep.mubr.f32.mxu0 %v490_v24  ;;  %v526_v27 = vld [vmem:[#allocation6 + $0x28] sm:$0xff]  ;;  %v525_v28 = vld [vmem:[#allocation6 + $0x20] sm:$0xff]  ;;  %v524_v29 = vld [vmem:[#allocation6 + $0x18] sm:$0xff] }
  0xb2   : > { %606 = vmatpush1.msra.mxu0 %v543_v9  ;;  %v523_v30 = vld [vmem:[#allocation6 + $0x10] sm:$0xff]  ;;  %v522_v31 = vld [vmem:[#allocation6 + $0x8] sm:$0xff]  ;;  %v521_v32 = vld [vmem:[#allocation6] sm:$0xff] }
  0xb3   : > { %607 = vmatprep.subr.mxu0 %v542_v10  ;;  %v584_v33 = vld [vmem:[#allocation6 + $0x1f8] sm:$0xff]  ;;  %v583_v34 = vld [vmem:[#allocation6 + $0x1f0] sm:$0xff]  ;;  %v582_v35 = vld [vmem:[#allocation6 + $0x1e8] sm:$0xff] }
  0xb4   : > { %608 = vmatpush1.msra.mxu0 %v541_v11  ;;  %v949_v36 = vld [vmem:[#allocation8 + $0xf8] sm:$0xff]  ;;  %v948_v37 = vld [vmem:[#allocation8 + $0xf0] sm:$0xff]  ;;  %v947_v38 = vld [vmem:[#allocation8 + $0xe8] sm:$0xff] }
  0xb5   : > { %609 = vmatprep.subr.mxu0 %v540_v12  ;;  %v581_v39 = vld [vmem:[#allocation6 + $0x1e0] sm:$0xff]  ;;  %994 = vmatprep.subr.mxu1 %v949_v36  ;;  %v580_v41 = vld [vmem:[#allocation6 + $0x1d8] sm:$0xff]  ;;  %v579_v43 = vld [vmem:[#allocation6 + $0x1d0] sm:$0xff] }
  0xb6   : > { %610 = vmatpush1.msra.mxu0 %v539_v13  ;;  %v946_v40 = vld [vmem:[#allocation8 + $0xe0] sm:$0xff]  ;;  %995 = vmatpush1.msra.mxu1 %v948_v37  ;;  %v945_v42 = vld [vmem:[#allocation8 + $0xd8] sm:$0xff]  ;;  %v944_v44 = vld [vmem:[#allocation8 + $0xd0] sm:$0xff] }
  0xb7   : > { %611 = vmatprep.subr.mxu0 %v538_v14  ;;  %996 = vmatprep.subr.mxu1 %v947_v38  ;;  %v578_v45 = vld [vmem:[#allocation6 + $0x1c8] sm:$0xff]  ;;  %v577_v47 = vld [vmem:[#allocation6 + $0x1c0] sm:$0xff]  ;;  %v576_v49 = vld [vmem:[#allocation6 + $0x1b8] sm:$0xff] }
  0xb8   : > { %612 = vmatpush1.msra.mxu0 %v537_v15  ;;  %997 = vmatpush1.msra.mxu1 %v946_v40  ;;  %v943_v46 = vld [vmem:[#allocation8 + $0xc8] sm:$0xff]  ;;  %v942_v48 = vld [vmem:[#allocation8 + $0xc0] sm:$0xff]  ;;  %v941_v50 = vld [vmem:[#allocation8 + $0xb8] sm:$0xff] }
  0xb9   : > { %613 = vmatprep.subr.mxu0 %v536_v16  ;;  %998 = vmatprep.subr.mxu1 %v945_v42  ;;  %v575_v51 = vld [vmem:[#allocation6 + $0x1b0] sm:$0xff]  ;;  %v574_v53 = vld [vmem:[#allocation6 + $0x1a8] sm:$0xff]  ;;  %v573_v55 = vld [vmem:[#allocation6 + $0x1a0] sm:$0xff] }
  0xba   : > { %614 = vmatpush1.msra.mxu0 %v535_v17  ;;  %999 = vmatpush1.msra.mxu1 %v944_v44  ;;  %v940_v52 = vld [vmem:[#allocation8 + $0xb0] sm:$0xff]  ;;  %v939_v54 = vld [vmem:[#allocation8 + $0xa8] sm:$0xff]  ;;  %v938_v56 = vld [vmem:[#allocation8 + $0xa0] sm:$0xff] }
  0xbb   : > { %615 = vmatprep.subr.mxu0 %v534_v18  ;;  %1000 = vmatprep.subr.mxu1 %v943_v46  ;;  %v572_v57 = vld [vmem:[#allocation6 + $0x198] sm:$0xff]  ;;  %v571_v59 = vld [vmem:[#allocation6 + $0x190] sm:$0xff]  ;;  %v570_v61 = vld [vmem:[#allocation6 + $0x188] sm:$0xff] }
  0xbc   : > { %616 = vmatpush1.msra.mxu0 %v533_v19  ;;  %1001 = vmatpush1.msra.mxu1 %v942_v48  ;;  %v937_v58 = vld [vmem:[#allocation8 + $0x98] sm:$0xff]  ;;  %v936_v60 = vld [vmem:[#allocation8 + $0x90] sm:$0xff]  ;;  %v935_v62 = vld [vmem:[#allocation8 + $0x88] sm:$0xff] }
  0xbd   : > { %617 = vmatprep.subr.mxu0 %v532_v20  ;;  %1002 = vmatprep.subr.mxu1 %v941_v50  ;;  %v569_v63 = vld [vmem:[#allocation6 + $0x180] sm:$0xff]  ;;  %v568_v1 = vld [vmem:[#allocation6 + $0x178] sm:$0xff]  ;;  %v567_v3 = vld [vmem:[#allocation6 + $0x170] sm:$0xff] }
  0xbe   : > { %618 = vmatpush1.msra.mxu0 %v531_v21  ;;  %1003 = vmatpush1.msra.mxu1 %v940_v52  ;;  %v934_v0 = vld [vmem:[#allocation8 + $0x80] sm:$0xff]  ;;  %v933_v2 = vld [vmem:[#allocation8 + $0x78] sm:$0xff]  ;;  %v932_v4 = vld [vmem:[#allocation8 + $0x70] sm:$0xff] }
  0xbf   : > { %619 = vmatprep.subr.mxu0 %v530_v22  ;;  %1004 = vmatprep.subr.mxu1 %v939_v54  ;;  %v566_v5 = vld [vmem:[#allocation6 + $0x168] sm:$0xff]  ;;  %v565_v7 = vld [vmem:[#allocation6 + $0x160] sm:$0xff]  ;;  %v564_v9 = vld [vmem:[#allocation6 + $0x158] sm:$0xff] }
  0xc0   : > { %620 = vmatpush1.msra.mxu0 %v529_v23  ;;  %1005 = vmatpush1.msra.mxu1 %v938_v56  ;;  %v931_v6 = vld [vmem:[#allocation8 + $0x68] sm:$0xff]  ;;  %v930_v8 = vld [vmem:[#allocation8 + $0x60] sm:$0xff]  ;;  %v929_v10 = vld [vmem:[#allocation8 + $0x58] sm:$0xff] }
  0xc1   : > { %621 = vmatprep.subr.mxu0 %v528_v25  ;;  %1006 = vmatprep.subr.mxu1 %v937_v58  ;;  %v563_v11 = vld [vmem:[#allocation6 + $0x150] sm:$0xff]  ;;  %v562_v13 = vld [vmem:[#allocation6 + $0x148] sm:$0xff]  ;;  %v561_v15 = vld [vmem:[#allocation6 + $0x140] sm:$0xff] }
  0xc2   : > { %622 = vmatpush1.msra.mxu0 %v527_v26  ;;  %1007 = vmatpush1.msra.mxu1 %v936_v60  ;;  %v928_v12 = vld [vmem:[#allocation8 + $0x50] sm:$0xff]  ;;  %v927_v14 = vld [vmem:[#allocation8 + $0x48] sm:$0xff]  ;;  %v926_v16 = vld [vmem:[#allocation8 + $0x40] sm:$0xff] }
  0xc3   : > { %623 = vmatprep.subr.mxu0 %v526_v27  ;;  %1008 = vmatprep.subr.mxu1 %v935_v62  ;;  %v560_v17 = vld [vmem:[#allocation6 + $0x138] sm:$0xff]  ;;  %v559_v19 = vld [vmem:[#allocation6 + $0x130] sm:$0xff]  ;;  %v558_v21 = vld [vmem:[#allocation6 + $0x128] sm:$0xff] }
  0xc4   : > { %624 = vmatpush1.msra.mxu0 %v525_v28  ;;  %1009 = vmatpush1.msra.mxu1 %v934_v0  ;;  %v925_v18 = vld [vmem:[#allocation8 + $0x38] sm:$0xff]  ;;  %v924_v20 = vld [vmem:[#allocation8 + $0x30] sm:$0xff]  ;;  %v923_v22 = vld [vmem:[#allocation8 + $0x28] sm:$0xff] }
  0xc5   : > { %625 = vmatprep.subr.mxu0 %v524_v29  ;;  %1010 = vmatprep.subr.mxu1 %v933_v2  ;;  %v557_v23 = vld [vmem:[#allocation6 + $0x120] sm:$0xff]  ;;  %v556_v25 = vld [vmem:[#allocation6 + $0x118] sm:$0xff]  ;;  %v555_v27 = vld [vmem:[#allocation6 + $0x110] sm:$0xff] }
  0xc6   : > { %626 = vmatpush1.msra.mxu0 %v523_v30  ;;  %1011 = vmatpush1.msra.mxu1 %v932_v4  ;;  %v922_v24 = vld [vmem:[#allocation8 + $0x20] sm:$0xff]  ;;  %v921_v26 = vld [vmem:[#allocation8 + $0x18] sm:$0xff]  ;;  %v920_v28 = vld [vmem:[#allocation8 + $0x10] sm:$0xff] }
  0xc7   : > { %627 = vmatprep.subr.mxu0 %v522_v31  ;;  %1012 = vmatprep.subr.mxu1 %v931_v6  ;;  %v554_v29 = vld [vmem:[#allocation6 + $0x108] sm:$0xff]  ;;  %v553_v31 = vld [vmem:[#allocation6 + $0x100] sm:$0xff]  ;;  %v980_v36 = vld [vmem:[#allocation8 + $0x1f0] sm:$0xff] }
  0xc8   : > { %628 = vmatpush1.msra.mxu0 %v521_v32  ;;  %1013 = vmatpush1.msra.mxu1 %v930_v8  ;;  %v919_v30 = vld [vmem:[#allocation8 + $0x8] sm:$0xff]  ;;  %v918_v32 = vld [vmem:[#allocation8] sm:$0xff]  ;;  %v977_v40 = vld [vmem:[#allocation8 + $0x1d8] sm:$0xff] }
  0xc9   : > { %629 = vmatprep.subr.mxu0 %v584_v33  ;;  %1014 = vmatprep.subr.mxu1 %v929_v10  ;;  %v489_v33 = vld [vmem:[%s3293_s7] sm:$0xff]  ;;  %v979_v37 = vld [vmem:[#allocation8 + $0x1e8] sm:$0xff]  ;;  %v976_v42 = vld [vmem:[#allocation8 + $0x1d0] sm:$0xff] }
  0xca   : > { %630 = vmatpush2.msra.mxu0 %v583_v34  ;;  %1015 = vmatpush1.msra.mxu1 %v928_v12  ;;  %v981_v34 = vld [vmem:[#allocation8 + $0x1f8] sm:$0xff]  ;;  %v978_v38 = vld [vmem:[#allocation8 + $0x1e0] sm:$0xff]  ;;  %v498_v46 = vld [vmem:[%s3293_s7 + $0x48] sm:$0xff] }
  0xcb   : > { %631 = vmatprep.subr.mxu0 %v582_v35  ;;  %1016 = vmatprep.subr.mxu1 %v927_v14  ;;  %v492_v35 = vld [vmem:[%s3293_s7 + $0x18] sm:$0xff]  ;;  %v502_v50 = vld [vmem:[%s3293_s7 + $0x68] sm:$0xff] }
  0xcc   : > { %632 = vmatpush2.msra.mxu0 %v581_v39  ;;  %1017 = vmatpush1.msra.mxu1 %v926_v16  ;;  %v491_v39 = vld [vmem:[%s3293_s7 + $0x10] sm:$0xff]  ;;  %v496_v44 = vld [vmem:[%s3293_s7 + $0x38] sm:$0xff]  ;;  %v506_v54 = vld [vmem:[%s3293_s7 + $0x88] sm:$0xff] }
  0xcd   : > { %633 = vmatprep.subr.mxu0 %v580_v41  ;;  %1018 = vmatprep.subr.mxu1 %v925_v18  ;;  %v494_v41 = vld [vmem:[%s3293_s7 + $0x28] sm:$0xff]  ;;  %v500_v48 = vld [vmem:[%s3293_s7 + $0x58] sm:$0xff] }
  0xce   : > { %634 = vmatpush2.msra.mxu0 %v579_v43  ;;  %1019 = vmatpush1.msra.mxu1 %v924_v20  ;;  %v493_v43 = vld [vmem:[%s3293_s7 + $0x20] sm:$0xff]  ;;  %v504_v52 = vld [vmem:[%s3293_s7 + $0x78] sm:$0xff]  ;;  %v510_v58 = vld [vmem:[%s3293_s7 + $0xa8] sm:$0xff] }
  0xcf   : > { %635 = vmatprep.subr.mxu0 %v578_v45  ;;  %1020 = vmatprep.subr.mxu1 %v923_v22  ;;  %v495_v45 = vld [vmem:[%s3293_s7 + $0x30] sm:$0xff]  ;;  %v508_v56 = vld [vmem:[%s3293_s7 + $0x98] sm:$0xff]  ;;  %v514_v62 = vld [vmem:[%s3293_s7 + $0xc8] sm:$0xff] }
  0xd0   : > { %636 = vmatpush2.msra.mxu0 %v577_v47  ;;  %1021 = vmatpush1.msra.mxu1 %v922_v24  ;;  %v497_v47 = vld [vmem:[%s3293_s7 + $0x40] sm:$0xff]  ;;  %v512_v60 = vld [vmem:[%s3293_s7 + $0xb8] sm:$0xff]  ;;  %v518_v2 = vld [vmem:[%s3293_s7 + $0xe8] sm:$0xff] }
  0xd1   : > { %637 = vmatprep.subr.mxu0 %v576_v49  ;;  %1022 = vmatprep.subr.mxu1 %v921_v26  ;;  %v499_v49 = vld [vmem:[%s3293_s7 + $0x50] sm:$0xff]  ;;  %v516_v0 = vld [vmem:[%s3293_s7 + $0xd8] sm:$0xff]  ;;  %v975_v6 = vld [vmem:[#allocation8 + $0x1c8] sm:$0xff] }
  0xd2   : > { %638 = vmatpush2.msra.mxu0 %v575_v51  ;;  %1023 = vmatpush1.msra.mxu1 %v920_v28  ;;  %v501_v51 = vld [vmem:[%s3293_s7 + $0x60] sm:$0xff]  ;;  %v520_v4 = vld [vmem:[%s3293_s7 + $0xf8] sm:$0xff]  ;;  %v971_v10 = vld [vmem:[#allocation8 + $0x1a8] sm:$0xff] }
  0xd3   : > { %639 = vmatprep.subr.mxu0 %v574_v53  ;;  %1024 = vmatprep.subr.mxu1 %v919_v30  ;;  %v503_v53 = vld [vmem:[%s3293_s7 + $0x70] sm:$0xff]  ;;  %v973_v8 = vld [vmem:[#allocation8 + $0x1b8] sm:$0xff]  ;;  %v967_v14 = vld [vmem:[#allocation8 + $0x188] sm:$0xff] }
  0xd4   : > { %640 = vmatpush2.msra.mxu0 %v573_v55  ;;  %1025 = vmatpush1.msra.mxu1 %v918_v32  ;;  %v505_v55 = vld [vmem:[%s3293_s7 + $0x80] sm:$0xff]  ;;  %v969_v12 = vld [vmem:[#allocation8 + $0x198] sm:$0xff]  ;;  %v963_v18 = vld [vmem:[#allocation8 + $0x168] sm:$0xff] }
  0xd5   : > { %641 = vmatprep.subr.mxu0 %v572_v57  ;;  %1026 = vmatprep.subr.mxu1 %v981_v34  ;;  %v507_v57 = vld [vmem:[%s3293_s7 + $0x90] sm:$0xff]  ;;  %v965_v16 = vld [vmem:[#allocation8 + $0x178] sm:$0xff]  ;;  %v959_v22 = vld [vmem:[#allocation8 + $0x148] sm:$0xff] }
  0xd6   : > { %642 = vmatpush2.msra.mxu0 %v571_v59  ;;  %1027 = vmatpush2.msra.mxu1 %v980_v36  ;;  %v509_v59 = vld [vmem:[%s3293_s7 + $0xa0] sm:$0xff]  ;;  %v961_v20 = vld [vmem:[#allocation8 + $0x158] sm:$0xff]  ;;  %v955_v26 = vld [vmem:[#allocation8 + $0x128] sm:$0xff] }
  0xd7   : > { %643 = vmatprep.subr.mxu0 %v570_v61  ;;  %1028 = vmatprep.subr.mxu1 %v979_v37  ;;  %v511_v61 = vld [vmem:[%s3293_s7 + $0xb0] sm:$0xff]  ;;  %v957_v24 = vld [vmem:[#allocation8 + $0x138] sm:$0xff]  ;;  %v951_v30 = vld [vmem:[#allocation8 + $0x108] sm:$0xff] }
  0xd8   : > { %644 = vmatpush2.msra.mxu0 %v569_v63  ;;  %1029 = vmatpush2.msra.mxu1 %v978_v38  ;;  %v513_v63 = vld [vmem:[%s3293_s7 + $0xc0] sm:$0xff]  ;;  %v953_v28 = vld [vmem:[#allocation8 + $0x118] sm:$0xff]  ;;  %v3370_v36 = vld [vmem:[#allocation11 + $0xe8] sm:$0xff] }
  0xd9   : > { %645 = vmatprep.subr.mxu0 %v568_v1  ;;  %1030 = vmatprep.subr.mxu1 %v977_v40  ;;  %v515_v1 = vld [vmem:[%s3293_s7 + $0xd0] sm:$0xff]  ;;  %v1346_v32 = vld [vmem:[#allocation11 + $0xf8] sm:$0xff]  ;;  %v3376_v38 = vld [vmem:[#allocation11 + $0xe0] sm:$0xff] }
  0xda   : > { %646 = vmatpush2.msra.mxu0 %v567_v3  ;;  %1031 = vmatpush2.msra.mxu1 %v976_v42  ;;  %v517_v3 = vld [vmem:[%s3293_s7 + $0xe0] sm:$0xff]  ;;  %v3365_v34 = vld [vmem:[#allocation11 + $0xf0] sm:$0xff]  ;;  %v3373_v37 = vld [vmem:[#allocation11 + $0x68] sm:$0xff] }
  0xdb   : > { %647 = vmatprep.subr.mxu0 %v566_v5  ;;  %v519_v5 = vld [vmem:[%s3293_s7 + $0xf0] sm:$0xff]  ;;  %1032 = vmatprep.subr.mxu1 %v975_v6  ;;  %v3382_v40 = vld [vmem:[#allocation11 + $0xd8] sm:$0xff] }
  0xdc   : > { %648 = vmatpush2.msra.mxu0 %v565_v7  ;;  %v974_v7 = vld [vmem:[#allocation8 + $0x1c0] sm:$0xff]  ;;  %v3388_v42 = vld [vmem:[#allocation11 + $0xd0] sm:$0xff] }
  0xdd   : > { %649 = vmatprep.subr.mxu0 %v564_v9  ;;  %1033 = vmatpush2.msra.mxu1 %v974_v7  ;;  %v972_v9 = vld [vmem:[#allocation8 + $0x1b0] sm:$0xff] }
  0xde   : > { %650 = vmatpush2.msra.mxu0 %v563_v11  ;;  %1034 = vmatprep.subr.mxu1 %v973_v8  ;;  %v970_v11 = vld [vmem:[#allocation8 + $0x1a0] sm:$0xff] }
  0xdf   : > { %651 = vmatprep.subr.mxu0 %v562_v13  ;;  %1035 = vmatpush2.msra.mxu1 %v972_v9  ;;  %v968_v13 = vld [vmem:[#allocation8 + $0x190] sm:$0xff] }
  0xe0   : > { %652 = vmatpush2.msra.mxu0 %v561_v15  ;;  %1036 = vmatprep.subr.mxu1 %v971_v10  ;;  %v966_v15 = vld [vmem:[#allocation8 + $0x180] sm:$0xff] }
  0xe1   : > { %653 = vmatprep.subr.mxu0 %v560_v17  ;;  %1037 = vmatpush2.msra.mxu1 %v970_v11  ;;  %v964_v17 = vld [vmem:[#allocation8 + $0x170] sm:$0xff] }
  0xe2   : > { %654 = vmatpush2.msra.mxu0 %v559_v19  ;;  %1038 = vmatprep.subr.mxu1 %v969_v12  ;;  %v962_v19 = vld [vmem:[#allocation8 + $0x160] sm:$0xff] }
  0xe3   : > { %655 = vmatprep.subr.mxu0 %v558_v21  ;;  %1039 = vmatpush2.msra.mxu1 %v968_v13  ;;  %v960_v21 = vld [vmem:[#allocation8 + $0x150] sm:$0xff] }
  0xe4   : > { %656 = vmatpush2.msra.mxu0 %v557_v23  ;;  %1040 = vmatprep.subr.mxu1 %v967_v14  ;;  %v958_v23 = vld [vmem:[#allocation8 + $0x140] sm:$0xff] }
  0xe5   : > { %657 = vmatprep.subr.mxu0 %v556_v25  ;;  %1041 = vmatpush2.msra.mxu1 %v966_v15  ;;  %v956_v25 = vld [vmem:[#allocation8 + $0x130] sm:$0xff] }
  0xe6   : > { %658 = vmatpush2.msra.mxu0 %v555_v27  ;;  %1042 = vmatprep.subr.mxu1 %v965_v16  ;;  %v954_v27 = vld [vmem:[#allocation8 + $0x120] sm:$0xff] }
  0xe7   : > { %659 = vmatprep.subr.mxu0 %v554_v29  ;;  %1043 = vmatpush2.msra.mxu1 %v964_v17  ;;  %v952_v29 = vld [vmem:[#allocation8 + $0x110] sm:$0xff] }
  0xe8   : > { %660 = vmatpush2.msra.mxu0 %v553_v31  ;;  %1044 = vmatprep.subr.mxu1 %v963_v18  ;;  %v950_v31 = vld [vmem:[#allocation8 + $0x100] sm:$0xff] }
  0xe9   : > { %662 = vmatmul.mubr.f32.vlgmr.msra.gmra.mxu0 %v489_v33  ;;  %1045 = vmatpush2.msra.mxu1 %v962_v19  ;;  %v3363_v33 = vld [vmem:[#allocation11 + $0x78] sm:$0xff] }
  0xea   : > { %667 = vmatprep.mubr.f32.mxu0 %v492_v35  ;;  %1046 = vmatprep.subr.mxu1 %v961_v20  ;;  %v3367_v35 = vld [vmem:[#allocation11 + $0x70] sm:$0xff] }
  0xeb   : > { %1047 = vmatpush2.msra.mxu1 %v960_v21  ;;  %2107 = vmatprep.subr.mxu0 %v1346_v32 }
  0xec   : > { %1048 = vmatprep.subr.mxu1 %v959_v22  ;;  %2108 = vmatpush3.msra.mxu0 %v3363_v33 }
  0xed   : > { %668 = vmatmul.mubr.f32.gmra.mxu0 %v491_v39  ;;  %1049 = vmatpush2.msra.mxu1 %v958_v23  ;;  %v3379_v39 = vld [vmem:[#allocation11 + $0x60] sm:$0xff] }
  0xee   : > { %673 = vmatprep.mubr.f32.mxu0 %v494_v41  ;;  %1050 = vmatprep.subr.mxu1 %v957_v24  ;;  %v3385_v41 = vld [vmem:[#allocation11 + $0x58] sm:$0xff] }
  0xef   : > { %1051 = vmatpush2.msra.mxu1 %v956_v25  ;;  %2109 = vmatprep.subr.mxu0 %v3365_v34 }
  0xf0   : > { %1052 = vmatprep.subr.mxu1 %v955_v26  ;;  %2110 = vmatpush3.msra.mxu0 %v3367_v35 }
  0xf1   : > { %674 = vmatmul.mubr.f32.gmra.mxu0 %v493_v43  ;;  %1053 = vmatpush2.msra.mxu1 %v954_v27  ;;  %v3391_v43 = vld [vmem:[#allocation11 + $0x50] sm:$0xff] }
  0xf2   : > { %679 = vmatprep.mubr.f32.mxu0 %v496_v44  ;;  %1054 = vmatprep.subr.mxu1 %v953_v28  ;;  %v587_v44 = vlaneseq }
  0xf3   : > { %1055 = vmatpush2.msra.mxu1 %v952_v29  ;;  %2111 = vmatprep.subr.mxu0 %v3370_v36 }
  0xf4   : > { %1056 = vmatprep.subr.mxu1 %v951_v30  ;;  %2112 = vmatpush3.msra.mxu0 %v3373_v37 }
  0xf5   : > { %680 = vmatmul.mubr.f32.gmra.mxu0 %v495_v45  ;;  %1057 = vmatpush2.msra.mxu1 %v950_v31  ;;  %v3396_v45 = vshrl.u32 %v587_v44, 7 }
  0xf6   : > { %685 = vmatprep.mubr.f32.mxu0 %v498_v46  ;;  %2251 = vmatprep.subr.mxu1 %v1346_v32 }
  0xf7   : > { %2113 = vmatprep.subr.mxu0 %v3376_v38  ;;  %v589_v46 = vsub.s32 0, %v3396_v45 }
  0xf8   : > { %2114 = vmatpush3.msra.mxu0 %v3379_v39 }
  0xf9   : > { %686 = vmatmul.mubr.f32.gmra.mxu0 %v497_v47  ;;  %2115 = vmatprep.subr.mxu0 %v3382_v40  ;;  %v585_v47 = vld [vmem:[%s4045_s23] sm:$0x3] }
  0xfa   : > { %691 = vmatprep.mubr.f32.mxu0 %v500_v48  ;;  %2116 = vmatpush3.msra.mxu0 %v3385_v41  ;;  %v593_v48 = vsub.s32 1, %v3396_v45 }
  0xfb   : > { %2117 = vmatprep.subr.mxu0 %v3388_v42 }
  0xfc   : > { %2118 = vmatpush3.msra.mxu0 %v3391_v43 }
  0xfd   : > { %692 = vmatmul.mubr.f32.gmra.mxu0 %v499_v49  ;;  %v3405_v49 = vrot.slane %v585_v47, %v589_v46 }
  0xfe   : > { %697 = vmatprep.mubr.f32.mxu0 %v502_v50  ;;  %v3409_v50 = vrot.slane %v585_v47, %v593_v48 }
 0x101   : > { %698 = vmatmul.mubr.f32.gmra.mxu0 %v501_v51 }
 0x102   : > { %703 = vmatprep.mubr.f32.mxu0 %v504_v52 }
 0x105   : > { %704 = vmatmul.mubr.f32.gmra.mxu0 %v503_v53 }
 0x106   : > { %709 = vmatprep.mubr.f32.mxu0 %v506_v54 }
 0x109   : > { %710 = vmatmul.mubr.f32.gmra.mxu0 %v505_v55 }
 0x10a   : > { %715 = vmatprep.mubr.f32.mxu0 %v508_v56 }
 0x10d   : > { %716 = vmatmul.mubr.f32.gmra.mxu0 %v507_v57 }
 0x10e   : > { %721 = vmatprep.mubr.f32.mxu0 %v510_v58 }
 0x111   : > { %722 = vmatmul.mubr.f32.gmra.mxu0 %v509_v59 }
 0x112   : > { %727 = vmatprep.mubr.f32.mxu0 %v512_v60 }
 0x115   : > { %728 = vmatmul.mubr.f32.gmra.mxu0 %v511_v61 }
 0x116   : > { %733 = vmatprep.mubr.f32.mxu0 %v514_v62 }
 0x119   : > { %734 = vmatmul.mubr.f32.gmra.mxu0 %v513_v63 }
 0x11a   : > { %739 = vmatprep.mubr.f32.mxu0 %v516_v0 }
 0x11d   : > { %740 = vmatmul.mubr.f32.gmra.mxu0 %v515_v1 }
 0x11e   : > { %745 = vmatprep.mubr.f32.mxu0 %v518_v2 }
 0x121   : > { %746 = vmatmul.mubr.f32.gmra.mxu0 %v517_v3 }
 0x122   : > { %751 = vmatprep.mubr.f32.mxu0 %v520_v4 }
 0x125   : > { %752 = vmatmul.mubr.f32.gmra.mxu0 %v519_v5 }
 0x1a9   : > { %v663_v51 = vpop.f32.mrf.mxu0 }
 0x1aa   : > { %v664_v52 = vadd.f32 %v663_v51, %v3405_v49 }
 0x1ab   : > { %v665_v53 = vpop.f32.mrf.mxu0 }
 0x1ac   : > { %v790_v54 = vmul.f32 0.70710677, %v664_v52  ;;  %v666_v55 = vadd.f32 %v665_v53, %v3409_v50  ;;  %v758_v23 = vmul.f32 0.5, %v664_v52 }
 0x1ad   : > { %v669_v56 = vpop.f32.mrf.mxu0 }
 0x1ae   : > { %2494 = verf.f32 %v790_v54  ;;  %v791_v57 = vmul.f32 0.70710677, %v666_v55  ;;  %v670_v58 = vadd.f32 %v669_v56, %v3405_v49  ;;  %v759_v25 = vmul.f32 0.5, %v666_v55 }
 0x1af   : > { %v671_v59 = vpop.f32.mrf.mxu0 }
 0x1b0   : > { %2496 = verf.f32 %v791_v57  ;;  %v792_v60 = vmul.f32 0.70710677, %v670_v58  ;;  %v672_v61 = vadd.f32 %v671_v59, %v3409_v50  ;;  %v760_v56 = vmul.f32 0.5, %v670_v58 }
 0x1b1   : > { %v675_v62 = vpop.f32.mrf.mxu0 }
 0x1b2   : > { %2498 = verf.f32 %v792_v60  ;;  %v793_v63 = vmul.f32 0.70710677, %v672_v61  ;;  %v3416_v0 = vadd.f32 %v675_v62, %v3405_v49  ;;  %v761_v53 = vmul.f32 0.5, %v672_v61 }
 0x1b3   : > { %v677_v1 = vpop.f32.mrf.mxu0 }
 0x1b4   : > { %2500 = verf.f32 %v793_v63  ;;  %v794_v2 = vmul.f32 0.70710677, %v3416_v0  ;;  %v678_v3 = vadd.f32 %v677_v1, %v3409_v50 }
 0x1b5   : > { %v681_v4 = vpop.f32.mrf.mxu0 }
 0x1b6   : > { %2502 = verf.f32 %v794_v2  ;;  %v795_v5 = vmul.f32 0.70710677, %v678_v3  ;;  %v3421_v6 = vadd.f32 %v681_v4, %v3405_v49 }
 0x1b7   : > { %v683_v7 = vpop.f32.mrf.mxu0 }
 0x1b8   : > { %2504 = verf.f32 %v795_v5  ;;  %v796_v8 = vmul.f32 0.70710677, %v3421_v6  ;;  %v3425_v9 = vadd.f32 %v683_v7, %v3409_v50  ;;  %v762_v5 = vmul.f32 0.5, %v3416_v0 }
 0x1b9   : > { %v687_v10 = vpop.f32.mrf.mxu0  ;;  %v763_v7 = vmul.f32 0.5, %v678_v3 }
 0x1ba   : > { %2506 = verf.f32 %v796_v8  ;;  %v797_v11 = vmul.f32 0.70710677, %v3425_v9  ;;  %v3429_v12 = vadd.f32 %v687_v10, %v3405_v49 }
 0x1bb   : > { %v2495_v13 = vpop.eup %2494  ;;  %v689_v14 = vpop.f32.mrf.mxu0 }
 0x1bc   : > { %2508 = verf.f32 %v797_v11  ;;  %v798_v15 = vmul.f32 0.70710677, %v3429_v12  ;;  %v3433_v16 = vadd.f32 %v689_v14, %v3409_v50  ;;  %v854_v19 = vadd.f32 1.0, %v2495_v13 }
 0x1bd   : > { %v2497_v17 = vpop.eup %2496  ;;  %v693_v18 = vpop.f32.mrf.mxu0 }
 0x1be   : > { %2510 = verf.f32 %v798_v15  ;;  %v799_v20 = vmul.f32 0.70710677, %v3433_v16  ;;  %v3437_v21 = vadd.f32 %v693_v18, %v3405_v49  ;;  %v855_v26 = vadd.f32 1.0, %v2497_v17 }
 0x1bf   : > { %v2499_v22 = vpop.eup %2498  ;;  %v695_v24 = vpop.f32.mrf.mxu0  ;;  %v886_v32 = vmul.f32 %v854_v19, %v758_v23  ;;  %v765_v18 = vmul.f32 0.5, %v3425_v9 }
 0x1c0   : > { %2512 = verf.f32 %v799_v20  ;;  %v800_v27 = vmul.f32 0.70710677, %v3437_v21  ;;  %v3441_v28 = vadd.f32 %v695_v24, %v3409_v50  ;;  %v887_v31 = vmul.f32 %v855_v26, %v759_v25 }
 0x1c1   : > { %v2501_v29 = vpop.eup %2500  ;;  %v699_v30 = vpop.f32.mrf.mxu0  ;;  %v856_v51 = vadd.f32 1.0, %v2499_v22  ;;  %v764_v20 = vmul.f32 0.5, %v3421_v6 }
 0x1c2   : > { %2514 = verf.f32 %v800_v27  ;;  %v801_v44 = vmul.f32 0.70710677, %v3441_v28  ;;  %v3445_v47 = vadd.f32 %v699_v30, %v3405_v49  ;;  %1058 = vmatprep.mubr.f32.mxu1 %v887_v31  ;;  %v857_v55 = vadd.f32 1.0, %v2501_v29 }
 0x1c3   : > { %v2503_v52 = vpop.eup %2502  ;;  %v701_v54 = vpop.f32.mrf.mxu0  ;;  %1059 = vmatmul.mubr.f32.vlgmr.msra.gmra.mxu1 %v886_v32  ;;  %v888_v58 = vmul.f32 %v856_v51, %v760_v56  ;;  %v766_v27 = vmul.f32 0.5, %v3429_v12  ;;  %v768_v56 = vmul.f32 0.5, %v3437_v21 }
 0x1c4   : > { %2516 = verf.f32 %v801_v44  ;;  %v802_v57 = vmul.f32 0.70710677, %v3445_v47  ;;  %v3449_v59 = vadd.f32 %v701_v54, %v3409_v50  ;;  %v889_v63 = vmul.f32 %v857_v55, %v761_v53  ;;  %2267 = vmatpush3.msra.mxu1 %v3363_v33 }
 0x1c5   : > { %v2505_v60 = vpop.eup %2504  ;;  %v705_v62 = vpop.f32.mrf.mxu0  ;;  %v858_v1 = vadd.f32 1.0, %v2503_v52  ;;  %2252 = vmatprep.subr.mxu1 %v3365_v34  ;;  %v770_v21 = vmul.f32 0.5, %v3445_v47 }
 0x1c6   : > { %2518 = verf.f32 %v802_v57  ;;  %v803_v61 = vmul.f32 0.70710677, %v3449_v59  ;;  %v3454_v2 = vadd.f32 %v705_v62, %v3405_v49  ;;  %1064 = vmatprep.mubr.f32.mxu1 %v889_v63  ;;  %v859_v10 = vadd.f32 1.0, %v2505_v60  ;;  %2268 = vmatpush3.msra.mxu1 %v3367_v35 }
 0x1c7   : > { %v2507_v4 = vpop.eup %2506  ;;  %v707_v8 = vpop.f32.mrf.mxu0  ;;  %1065 = vmatmul.mubr.f32.gmra.mxu1 %v888_v58  ;;  %2253 = vmatprep.subr.mxu1 %v3370_v36  ;;  %v890_v15 = vmul.f32 %v858_v1, %v762_v5 }
 0x1c8   : > { %2520 = verf.f32 %v803_v61  ;;  %v804_v33 = vmul.f32 0.70710677, %v3454_v2  ;;  %v3461_v11 = vadd.f32 %v707_v8, %v3409_v50  ;;  %v891_v14 = vmul.f32 %v859_v10, %v763_v7  ;;  %2269 = vmatpush3.msra.mxu1 %v3373_v37 }
 0x1c9   : > { %v2509_v13 = vpop.eup %2508  ;;  %v711_v34 = vpop.f32.mrf.mxu0  ;;  %v860_v3 = vadd.f32 1.0, %v2507_v4  ;;  %2254 = vmatprep.subr.mxu1 %v3376_v38  ;;  %v771_v7 = vmul.f32 0.5, %v3449_v59 }
 0x1ca   : > { %2522 = verf.f32 %v804_v33  ;;  %v805_v0 = vmul.f32 0.70710677, %v3461_v11  ;;  %v3467_v35 = vadd.f32 %v711_v34, %v3405_v49  ;;  %1070 = vmatprep.mubr.f32.mxu1 %v891_v14  ;;  %v861_v19 = vadd.f32 1.0, %v2509_v13  ;;  %2270 = vmatpush3.msra.mxu1 %v3379_v39 }
 0x1cb   : > { %v2511_v17 = vpop.eup %2510  ;;  %v713_v36 = vpop.f32.mrf.mxu0  ;;  %1071 = vmatmul.mubr.f32.gmra.mxu1 %v890_v15  ;;  %2255 = vmatprep.subr.mxu1 %v3382_v40  ;;  %v892_v25 = vmul.f32 %v860_v3, %v764_v20  ;;  %v767_v40 = vmul.f32 0.5, %v3433_v16  ;;  %v772_v20 = vmul.f32 0.5, %v3454_v2 }
 0x1cc   : > { %2524 = verf.f32 %v805_v0  ;;  %v806_v37 = vmul.f32 0.70710677, %v3467_v35  ;;  %v3475_v22 = vadd.f32 %v713_v36, %v3409_v50  ;;  %v893_v24 = vmul.f32 %v861_v19, %v765_v18  ;;  %2271 = vmatpush3.msra.mxu1 %v3385_v41 }
 0x1cd   : > { %v2513_v38 = vpop.eup %2512  ;;  %v717_v23 = vpop.f32.mrf.mxu0  ;;  %v862_v9 = vadd.f32 1.0, %v2511_v17  ;;  %2256 = vmatprep.subr.mxu1 %v3388_v42  ;;  %v773_v18 = vmul.f32 0.5, %v3461_v11  ;;  %v774_v2 = vmul.f32 0.5, %v3467_v35 }
 0x1ce   : > { %2526 = verf.f32 %v806_v37  ;;  %v807_v39 = vmul.f32 0.70710677, %v3475_v22  ;;  %v3481_v6 = vadd.f32 %v717_v23, %v3405_v49  ;;  %1076 = vmatprep.mubr.f32.mxu1 %v893_v24  ;;  %v863_v30 = vadd.f32 1.0, %v2513_v38  ;;  %2272 = vmatpush3.msra.mxu1 %v3391_v43 }
 0x1cf   : > { %v2515_v26 = vpop.eup %2514  ;;  %v719_v29 = vpop.f32.mrf.mxu0  ;;  %1077 = vmatmul.mubr.f32.gmra.mxu1 %v892_v25  ;;  %v894_v51 = vmul.f32 %v862_v9, %v766_v27  ;;  %v769_v43 = vmul.f32 0.5, %v3441_v28 }
 0x1d0   : > { %2528 = verf.f32 %v807_v39  ;;  %v808_v41 = vmul.f32 0.70710677, %v3481_v6  ;;  %v3489_v31 = vadd.f32 %v719_v29, %v3409_v50  ;;  %v895_v42 = vmul.f32 %v863_v30, %v767_v40 }
 0x1d1   : > { %v2517_v32 = vpop.eup %2516  ;;  %v723_v44 = vpop.f32.mrf.mxu0  ;;  %v864_v52 = vadd.f32 1.0, %v2515_v26  ;;  %v775_v40 = vmul.f32 0.5, %v3475_v22 }
 0x1d2   : > { %2530 = verf.f32 %v808_v41  ;;  %v809_v12 = vmul.f32 0.70710677, %v3489_v31  ;;  %v3493_v16 = vadd.f32 %v723_v44, %v3405_v49  ;;  %1082 = vmatprep.mubr.f32.mxu1 %v895_v42  ;;  %v865_v55 = vadd.f32 1.0, %v2517_v32 }
 0x1d3   : > { %v2519_v53 = vpop.eup %2518  ;;  %v725_v54 = vpop.f32.mrf.mxu0  ;;  %1083 = vmatmul.mubr.f32.gmra.mxu1 %v894_v51  ;;  %v896_v4 = vmul.f32 %v864_v52, %v768_v56  ;;  %v776_v56 = vmul.f32 0.5, %v3481_v6 }
 0x1d4   : > { %2532 = verf.f32 %v809_v12  ;;  %v810_v57 = vmul.f32 0.70710677, %v3493_v16  ;;  %v3499_v60 = vadd.f32 %v725_v54, %v3409_v50  ;;  %v897_v1 = vmul.f32 %v865_v55, %v769_v43 }
 0x1d5   : > { %v2521_v62 = vpop.eup %2520  ;;  %v729_v63 = vpop.f32.mrf.mxu0  ;;  %v866_v61 = vadd.f32 1.0, %v2519_v53  ;;  %v777_v43 = vmul.f32 0.5, %v3489_v31 }
 0x1d6   : > { %2534 = verf.f32 %v810_v57  ;;  %v811_v58 = vmul.f32 0.70710677, %v3499_v60  ;;  %v3503_v28 = vadd.f32 %v729_v63, %v3405_v49  ;;  %1088 = vmatprep.mubr.f32.mxu1 %v897_v1  ;;  %v867_v10 = vadd.f32 1.0, %v2521_v62 }
 0x1d7   : > { %v2523_v5 = vpop.eup %2522  ;;  %v731_v8 = vpop.f32.mrf.mxu0  ;;  %1089 = vmatmul.mubr.f32.gmra.mxu1 %v896_v4  ;;  %v898_v0 = vmul.f32 %v866_v61, %v770_v21  ;;  %v779_v6 = vmul.f32 0.5, %v3499_v60 }
 0x1d8   : > { %2536 = verf.f32 %v811_v58  ;;  %v812_v33 = vmul.f32 0.70710677, %v3503_v28  ;;  %v3509_v13 = vadd.f32 %v731_v8, %v3409_v50  ;;  %v899_v15 = vmul.f32 %v867_v10, %v771_v7 }
 0x1d9   : > { %v2525_v34 = vpop.eup %2524  ;;  %v735_v14 = vpop.f32.mrf.mxu0  ;;  %v868_v59 = vadd.f32 1.0, %v2523_v5  ;;  %v778_v7 = vmul.f32 0.5, %v3493_v16  ;;  %v780_v60 = vmul.f32 0.5, %v3503_v28 }
 0x1da   : > { %2538 = verf.f32 %v812_v33  ;;  %v813_v3 = vmul.f32 0.70710677, %v3509_v13  ;;  %v3513_v47 = vadd.f32 %v735_v14, %v3405_v49  ;;  %1094 = vmatprep.mubr.f32.mxu1 %v899_v15  ;;  %v869_v19 = vadd.f32 1.0, %v2525_v34 }
 0x1db   : > { %v2527_v17 = vpop.eup %2526  ;;  %v737_v36 = vpop.f32.mrf.mxu0  ;;  %1095 = vmatmul.mubr.f32.gmra.mxu1 %v898_v0  ;;  %v900_v26 = vmul.f32 %v868_v59, %v772_v20  ;;  %v781_v15 = vmul.f32 0.5, %v3509_v13 }
 0x1dc   : > { %2540 = verf.f32 %v813_v3  ;;  %v814_v37 = vmul.f32 0.70710677, %v3513_v47  ;;  %v3519_v38 = vadd.f32 %v737_v36, %v3409_v50  ;;  %v901_v9 = vmul.f32 %v869_v19, %v773_v18 }
 0x1dd   : > { %v2529_v23 = vpop.eup %2528  ;;  %v741_v24 = vpop.f32.mrf.mxu0  ;;  %v870_v39 = vadd.f32 1.0, %v2527_v17 }
 0x1de   : > { %2542 = verf.f32 %v814_v37  ;;  %v815_v25 = vmul.f32 0.70710677, %v3519_v38  ;;  %v3523_v11 = vadd.f32 %v741_v24, %v3405_v49  ;;  %1100 = vmatprep.mubr.f32.mxu1 %v901_v9  ;;  %v871_v30 = vadd.f32 1.0, %v2529_v23 }
 0x1df   : > { %v2531_v27 = vpop.eup %2530  ;;  %v743_v29 = vpop.f32.mrf.mxu0  ;;  %1101 = vmatmul.mubr.f32.gmra.mxu1 %v900_v26  ;;  %v902_v12 = vmul.f32 %v870_v39, %v774_v2  ;;  %v782_v23 = vmul.f32 0.5, %v3513_v47 }
 0x1e0   : > { %2544 = verf.f32 %v815_v25  ;;  %v816_v41 = vmul.f32 0.70710677, %v3523_v11  ;;  %v744_v32 = vadd.f32 %v743_v29, %v3409_v50  ;;  %v903_v51 = vmul.f32 %v871_v30, %v775_v40 }
 0x1e1   : > { %v2533_v44 = vpop.eup %2532  ;;  %v747_v42 = vpop.f32.mrf.mxu0  ;;  %v872_v35 = vadd.f32 1.0, %v2531_v27  ;;  %v784_v2 = vmul.f32 0.5, %v3523_v11 }
 0x1e2   : > { %2546 = verf.f32 %v816_v41  ;;  %v817_v52 = vmul.f32 0.70710677, %v744_v32  ;;  %v3530_v53 = vadd.f32 %v747_v42, %v3405_v49  ;;  %1106 = vmatprep.mubr.f32.mxu1 %v903_v51  ;;  %v873_v55 = vadd.f32 1.0, %v2533_v44 }
 0x1e3   : > { %v2535_v22 = vpop.eup %2534  ;;  %v749_v54 = vpop.f32.mrf.mxu0  ;;  %1107 = vmatmul.mubr.f32.gmra.mxu1 %v902_v12  ;;  %v904_v31 = vmul.f32 %v872_v35, %v776_v56  ;;  %v785_v39 = vmul.f32 0.5, %v744_v32  ;;  %v1324_v56 = vld [vmem:[#allocation11 + $0x48] sm:$0xff] }
 0x1e4   : > { %2548 = verf.f32 %v817_v52  ;;  %v818_v57 = vmul.f32 0.70710677, %v3530_v53  ;;  %v750_v62 = vadd.f32 %v749_v54, %v3409_v50  ;;  %v905_v61 = vmul.f32 %v873_v55, %v777_v43  ;;  %v1340_v55 = vld [vmem:[#allocation11 + $0xc8] sm:$0xff] }
 0x1e5   : > { %v2537_v63 = vpop.eup %2536  ;;  %v753_v1 = vpop.f32.mrf.mxu0  ;;  %v874_v58 = vadd.f32 1.0, %v2535_v22  ;;  %v786_v42 = vmul.f32 0.5, %v3530_v53  ;;  %2119 = vmatprep.subr.mxu0 %v1340_v55  ;;  %2257 = vmatprep.subr.mxu1 %v1340_v55  ;;  %v1339_v53 = vld [vmem:[#allocation11 + $0xc0] sm:$0xff] }
 0x1e6   : > { %2550 = verf.f32 %v818_v57  ;;  %v819_v4 = vmul.f32 0.70710677, %v750_v62  ;;  %v754_v5 = vadd.f32 %v753_v1, %v3405_v49  ;;  %1112 = vmatprep.mubr.f32.mxu1 %v905_v61  ;;  %v875_v10 = vadd.f32 1.0, %v2537_v63  ;;  %2120 = vmatpush3.msra.mxu0 %v1324_v56  ;;  %v1323_v57 = vld [vmem:[#allocation11 + $0x40] sm:$0xff]  ;;  %v1322_v63 = vld [vmem:[#allocation11 + $0x38] sm:$0xff]  ;;  %v1337_v1 = vld [vmem:[#allocation11 + $0xb0] sm:$0xff] }
 0x1e7   : > { %v2539_v21 = vpop.eup %2538  ;;  %v755_v8 = vpop.f32.mrf.mxu0  ;;  %1113 = vmatmul.mubr.f32.gmra.mxu1 %v904_v31  ;;  %v906_v3 = vmul.f32 %v874_v58, %v778_v7  ;;  %v787_v29 = vmul.f32 0.5, %v750_v62  ;;  %2121 = vmatprep.subr.mxu0 %v1339_v53  ;;  %v1338_v62 = vld [vmem:[#allocation11 + $0xb8] sm:$0xff]  ;;  %v1321_v61 = vld [vmem:[#allocation11 + $0x30] sm:$0xff]  ;;  %v1336_v58 = vld [vmem:[#allocation11 + $0xa8] sm:$0xff] }
 0x1e8   : > { %2552 = verf.f32 %v819_v4  ;;  %v820_v33 = vmul.f32 0.70710677, %v754_v5  ;;  %v756_v34 = vadd.f32 %v755_v8, %v3409_v50  ;;  %v907_v0 = vmul.f32 %v875_v10, %v779_v6  ;;  %2273 = vmatpush3.msra.mxu1 %v1324_v56  ;;  %2122 = vmatpush3.msra.mxu0 %v1323_v57  ;;  %v1320_v4 = vld [vmem:[#allocation11 + $0x28] sm:$0xff]  ;;  %v1319_v31 = vld [vmem:[#allocation11 + $0x20] sm:$0xff]  ;;  %v1318_v7 = vld [vmem:[#allocation11 + $0x18] sm:$0xff] }
 0x1e9   : > { %v2541_v14 = vpop.eup %2540  ;;  %v876_v17 = vadd.f32 1.0, %v2539_v21  ;;  %v783_v50 = vmul.f32 0.5, %v3519_v38  ;;  %v788_v11 = vmul.f32 0.5, %v754_v5  ;;  %2258 = vmatprep.subr.mxu1 %v1339_v53  ;;  %2123 = vmatprep.subr.mxu0 %v1338_v62  ;;  %v1335_v5 = vld [vmem:[#allocation11 + $0xa0] sm:$0xff]  ;;  %v1334_v21 = vld [vmem:[#allocation11 + $0x98] sm:$0xff]  ;;  %v1333_v6 = vld [vmem:[#allocation11 + $0x90] sm:$0xff] }
 0x1ea   : > { %2554 = verf.f32 %v820_v33  ;;  %v821_v49 = vmul.f32 0.70710677, %v756_v34  ;;  %v877_v59 = vadd.f32 1.0, %v2541_v14  ;;  %1118 = vmatprep.mubr.f32.mxu1 %v907_v0  ;;  %v789_v12 = vmul.f32 0.5, %v756_v34  ;;  %2274 = vmatpush3.msra.mxu1 %v1323_v57  ;;  %v1317_v8 = vld [vmem:[#allocation11 + $0x10] sm:$0xff]  ;;  %v1332_v10 = vld [vmem:[#allocation11 + $0x88] sm:$0xff] }
 0x1eb   : > { %v2543_v16 = vpop.eup %2542  ;;  %1119 = vmatmul.mubr.f32.gmra.mxu1 %v906_v3  ;;  %v908_v19 = vmul.f32 %v876_v17, %v780_v60  ;;  %2259 = vmatprep.subr.mxu1 %v1338_v62  ;;  %v1316_v33 = vld [vmem:[#allocation11 + $0x8] sm:$0xff]  ;;  %v1331_v34 = vld [vmem:[#allocation11 + $0x80] sm:$0xff] }
 0x1ec   : > { %2556 = verf.f32 %v821_v49  ;;  %v909_v18 = vmul.f32 %v877_v59, %v781_v15  ;;  %v878_v13 = vadd.f32 1.0, %v2543_v16  ;;  %2124 = vmatpush3.msra.mxu0 %v1322_v63  ;;  %2275 = vmatpush3.msra.mxu1 %v1322_v63  ;;  %v1315_v14 = vld [vmem:[#allocation11] sm:$0xff]  ;;  %v982_v15 = vld [vmem:[#allocation9] sm:$0x3] }
 0x1ed   : > { %v2545_v36 = vpop.eup %2544  ;;  %2125 = vmatprep.subr.mxu0 %v1337_v1  ;;  %2260 = vmatprep.subr.mxu1 %v1337_v1  ;;  %v3548_v0 = vrot.slane %v982_v15, %v589_v46  ;;  %v3552_v3 = vrot.slane %v982_v15, %v593_v48 }
 0x1ee   : > { %1124 = vmatprep.mubr.f32.mxu1 %v909_v18  ;;  %v879_v20 = vadd.f32 1.0, %v2545_v36  ;;  %v910_v25 = vmul.f32 %v878_v13, %v782_v23  ;;  %2126 = vmatpush3.msra.mxu0 %v1321_v61 }
 0x1ef   : > { %v2547_v37 = vpop.eup %2546  ;;  %1125 = vmatmul.mubr.f32.gmra.mxu1 %v908_v19  ;;  %2127 = vmatprep.subr.mxu0 %v1336_v58 }
 0x1f0   : > { %v911_v24 = vmul.f32 %v879_v20, %v783_v50  ;;  %v880_v26 = vadd.f32 1.0, %v2547_v37  ;;  %2276 = vmatpush3.msra.mxu1 %v1321_v61  ;;  %2128 = vmatpush3.msra.mxu0 %v1320_v4 }
 0x1f1   : > { %v2549_v9 = vpop.eup %2548  ;;  %2261 = vmatprep.subr.mxu1 %v1336_v58  ;;  %2129 = vmatprep.subr.mxu0 %v1335_v5 }
 0x1f2   : > { %1130 = vmatprep.mubr.f32.mxu1 %v911_v24  ;;  %v881_v28 = vadd.f32 1.0, %v2549_v9  ;;  %v912_v30 = vmul.f32 %v880_v26, %v784_v2  ;;  %2277 = vmatpush3.msra.mxu1 %v1320_v4 }
 0x1f3   : > { %v2551_v27 = vpop.eup %2550  ;;  %1131 = vmatmul.mubr.f32.gmra.mxu1 %v910_v25  ;;  %2262 = vmatprep.subr.mxu1 %v1335_v5 }
 0x1f4   : > { %v913_v38 = vmul.f32 %v881_v28, %v785_v39  ;;  %v882_v44 = vadd.f32 1.0, %v2551_v27  ;;  %2130 = vmatpush3.msra.mxu0 %v1319_v31  ;;  %2278 = vmatpush3.msra.mxu1 %v1319_v31 }
 0x1f5   : > { %v2553_v40 = vpop.eup %2552  ;;  %2131 = vmatprep.subr.mxu0 %v1334_v21  ;;  %2263 = vmatprep.subr.mxu1 %v1334_v21 }
 0x1f6   : > { %1136 = vmatprep.mubr.f32.mxu1 %v913_v38  ;;  %v883_v41 = vadd.f32 1.0, %v2553_v40  ;;  %v914_v52 = vmul.f32 %v882_v44, %v786_v42  ;;  %2132 = vmatpush3.msra.mxu0 %v1318_v7 }
 0x1f7   : > { %v2555_v47 = vpop.eup %2554  ;;  %1137 = vmatmul.mubr.f32.gmra.mxu1 %v912_v30  ;;  %2133 = vmatprep.subr.mxu0 %v1333_v6 }
 0x1f8   : > { %v915_v32 = vmul.f32 %v883_v41, %v787_v29  ;;  %v884_v22 = vadd.f32 1.0, %v2555_v47  ;;  %2279 = vmatpush3.msra.mxu1 %v1318_v7  ;;  %2134 = vmatpush3.msra.mxu0 %v1317_v8 }
 0x1f9   : > { %v2557_v51 = vpop.eup %2556  ;;  %2264 = vmatprep.subr.mxu1 %v1333_v6  ;;  %2135 = vmatprep.subr.mxu0 %v1332_v10 }
 0x1fa   : > { %1142 = vmatprep.mubr.f32.mxu1 %v915_v32  ;;  %v885_v35 = vadd.f32 1.0, %v2557_v51  ;;  %v916_v54 = vmul.f32 %v884_v22, %v788_v11  ;;  %2280 = vmatpush3.msra.mxu1 %v1317_v8 }
 0x1fb   : > { %1143 = vmatmul.mubr.f32.gmra.mxu1 %v914_v52  ;;  %2265 = vmatprep.subr.mxu1 %v1332_v10 }
 0x1fc   : > { %v917_v43 = vmul.f32 %v885_v35, %v789_v12  ;;  %2136 = vmatpush3.msra.mxu0 %v1316_v33  ;;  %2281 = vmatpush3.msra.mxu1 %v1316_v33 }
 0x1fd   : > { %2137 = vmatprep.subr.mxu0 %v1331_v34  ;;  %2266 = vmatprep.subr.mxu1 %v1331_v34 }
 0x1fe   : > { %1148 = vmatprep.mubr.f32.mxu1 %v917_v43  ;;  %2138 = vmatpush3.msra.mxu0 %v1315_v14 }
 0x1ff   : > { %1149 = vmatmul.mubr.f32.gmra.mxu1 %v916_v54 }
 0x200   : > { %2282 = vmatpush3.msra.mxu1 %v1315_v14 }
 0x283   : > { %v1060_v49 = vpop.f32.mrf.mxu1 }
 0x284   : > { %v1061_v59 = vadd.f32 %v1060_v49, %v3548_v0 }
 0x285   : > { %v1062_v17 = vpop.f32.mrf.mxu1 }
 0x286   : > { %v1187_v16 = vmul.f32 0.70710677, %v1061_v59  ;;  %v1063_v60 = vadd.f32 %v1062_v17, %v3552_v3  ;;  %v1155_v22 = vmul.f32 0.5, %v1061_v59 }
 0x287   : > { %v1066_v18 = vpop.f32.mrf.mxu1 }
 0x288   : > { %2558 = verf.f32 %v1187_v16  ;;  %v1188_v36 = vmul.f32 0.70710677, %v1063_v60  ;;  %v1067_v50 = vadd.f32 %v1066_v18, %v3548_v0  ;;  %v1156_v51 = vmul.f32 0.5, %v1063_v60 }
 0x289   : > { %v1068_v19 = vpop.f32.mrf.mxu1 }
 0x28a   : > { %2560 = verf.f32 %v1188_v36  ;;  %v1189_v46 = vmul.f32 0.70710677, %v1067_v50  ;;  %v1069_v20 = vadd.f32 %v1068_v19, %v3552_v3  ;;  %v1157_v21 = vmul.f32 0.5, %v1067_v50 }
 0x28b   : > { %v1072_v45 = vpop.f32.mrf.mxu1 }
 0x28c   : > { %2562 = verf.f32 %v1189_v46  ;;  %v1190_v48 = vmul.f32 0.70710677, %v1069_v20  ;;  %v1073_v13 = vadd.f32 %v1072_v45, %v3548_v0  ;;  %v1158_v4 = vmul.f32 0.5, %v1069_v20 }
 0x28d   : > { %v1074_v37 = vpop.f32.mrf.mxu1 }
 0x28e   : > { %2564 = verf.f32 %v1190_v48  ;;  %v1191_v23 = vmul.f32 0.70710677, %v1073_v13  ;;  %v1075_v24 = vadd.f32 %v1074_v37, %v3552_v3  ;;  %v1159_v17 = vmul.f32 0.5, %v1073_v13 }
 0x28f   : > { %v1078_v9 = vpop.f32.mrf.mxu1 }
 0x290   : > { %2566 = verf.f32 %v1191_v23  ;;  %v1192_v39 = vmul.f32 0.70710677, %v1075_v24  ;;  %v3561_v25 = vadd.f32 %v1078_v9, %v3548_v0  ;;  %v1160_v16 = vmul.f32 0.5, %v1075_v24 }
 0x291   : > { %v1080_v28 = vpop.f32.mrf.mxu1 }
 0x292   : > { %2568 = verf.f32 %v1192_v39  ;;  %v1193_v26 = vmul.f32 0.70710677, %v3561_v25  ;;  %v3565_v27 = vadd.f32 %v1080_v28, %v3552_v3  ;;  %v1161_v28 = vmul.f32 0.5, %v3561_v25 }
 0x293   : > { %v1084_v2 = vpop.f32.mrf.mxu1 }
 0x294   : > { %2570 = verf.f32 %v1193_v26  ;;  %v1194_v38 = vmul.f32 0.70710677, %v3565_v27  ;;  %v3569_v40 = vadd.f32 %v1084_v2, %v3548_v0  ;;  %v1162_v24 = vmul.f32 0.5, %v3565_v27 }
 0x295   : > { %v2559_v29 = vpop.eup %2558  ;;  %v1086_v30 = vpop.f32.mrf.mxu1 }
 0x296   : > { %2572 = verf.f32 %v1194_v38  ;;  %v1195_v41 = vmul.f32 0.70710677, %v3569_v40  ;;  %v1251_v47 = vadd.f32 1.0, %v2559_v29  ;;  %v3573_v42 = vadd.f32 %v1086_v30, %v3552_v3 }
 0x297   : > { %v2561_v44 = vpop.eup %2560  ;;  %v1090_v32 = vpop.f32.mrf.mxu1  ;;  %v1163_v25 = vmul.f32 0.5, %v3569_v40 }
 0x298   : > { %2574 = verf.f32 %v1195_v41  ;;  %v3576_v12 = vadd.f32 %v1090_v32, %v3548_v0  ;;  %v1252_v52 = vadd.f32 1.0, %v2561_v44  ;;  %v1196_v11 = vmul.f32 0.70710677, %v3573_v42 }
 0x299   : > { %v2563_v35 = vpop.eup %2562  ;;  %v1092_v43 = vpop.f32.mrf.mxu1  ;;  %v1283_v57 = vmul.f32 %v1251_v47, %v1155_v22 }
 0x29a   : > { %v1197_v54 = vmul.f32 0.70710677, %v3576_v12  ;;  %v3581_v55 = vadd.f32 %v1092_v43, %v3552_v3  ;;  %v1284_v56 = vmul.f32 %v1252_v52, %v1156_v51  ;;  %2576 = verf.f32 %v1196_v11 }
 0x29b   : > { %v2565_v53 = vpop.eup %2564  ;;  %v1096_v62 = vpop.f32.mrf.mxu1  ;;  %v1253_v61 = vadd.f32 1.0, %v2563_v35  ;;  %v1164_v51 = vmul.f32 0.5, %v3573_v42 }
 0x29c   : > { %2578 = verf.f32 %v1197_v54  ;;  %v1198_v63 = vmul.f32 0.70710677, %v3581_v55  ;;  %v3585_v1 = vadd.f32 %v1096_v62, %v3548_v0  ;;  %1418 = vmatprep.mubr.f32.mxu0 %v1284_v56  ;;  %v1254_v31 = vadd.f32 1.0, %v2565_v53 }
 0x29d   : > { %v2567_v58 = vpop.eup %2566  ;;  %v1098_v5 = vpop.f32.mrf.mxu1  ;;  %1419 = vmatmul.mubr.f32.vlgmr.msra.gmra.mxu0 %v1283_v57  ;;  %v1285_v49 = vmul.f32 %v1253_v61, %v1157_v21 }
 0x29e   : > { %2580 = verf.f32 %v1198_v63  ;;  %v1199_v7 = vmul.f32 0.70710677, %v3585_v1  ;;  %v3589_v6 = vadd.f32 %v1098_v5, %v3552_v3  ;;  %v1286_v33 = vmul.f32 %v1254_v31, %v1158_v4 }
 0x29f   : > { %v2569_v8 = vpop.eup %2568  ;;  %v1102_v10 = vpop.f32.mrf.mxu1  ;;  %v1255_v34 = vadd.f32 1.0, %v2567_v58  ;;  %v1166_v63 = vmul.f32 0.5, %v3581_v55  ;;  %v1165_v4 = vmul.f32 0.5, %v3576_v12  ;;  %v1167_v12 = vmul.f32 0.5, %v3585_v1 }
 0x2a0   : > { %2582 = verf.f32 %v1199_v7  ;;  %v1200_v14 = vmul.f32 0.70710677, %v3589_v6  ;;  %v3593_v15 = vadd.f32 %v1102_v10, %v3548_v0  ;;  %1423 = vmatprep.mubr.f32.mxu0 %v1286_v33  ;;  %v1256_v18 = vadd.f32 1.0, %v2569_v8 }
 0x2a1   : > { %v2571_v59 = vpop.eup %2570  ;;  %v1104_v60 = vpop.f32.mrf.mxu1  ;;  %1424 = vmatmul.mubr.f32.gmra.mxu0 %v1285_v49  ;;  %v1287_v45 = vmul.f32 %v1255_v34, %v1159_v17  ;;  %v1168_v49 = vmul.f32 0.5, %v3589_v6 }
 0x2a2   : > { %2584 = verf.f32 %v1200_v14  ;;  %v1201_v36 = vmul.f32 0.70710677, %v3593_v15  ;;  %v3597_v50 = vadd.f32 %v1104_v60, %v3552_v3  ;;  %v1288_v20 = vmul.f32 %v1256_v18, %v1160_v16 }
 0x2a3   : > { %v2573_v19 = vpop.eup %2572  ;;  %v1108_v46 = vpop.f32.mrf.mxu1  ;;  %v1257_v37 = vadd.f32 1.0, %v2571_v59 }
 0x2a4   : > { %2586 = verf.f32 %v1201_v36  ;;  %v1202_v48 = vmul.f32 0.70710677, %v3597_v50  ;;  %v3601_v13 = vadd.f32 %v1108_v46, %v3548_v0  ;;  %1428 = vmatprep.mubr.f32.mxu0 %v1288_v20  ;;  %v1258_v39 = vadd.f32 1.0, %v2573_v19 }
 0x2a5   : > { %v2575_v23 = vpop.eup %2574  ;;  %v1110_v9 = vpop.f32.mrf.mxu1  ;;  %1429 = vmatmul.mubr.f32.gmra.mxu0 %v1287_v45  ;;  %v1289_v47 = vmul.f32 %v1257_v37, %v1161_v28 }
 0x2a6   : > { %2588 = verf.f32 %v1202_v48  ;;  %v1203_v26 = vmul.f32 0.70710677, %v3601_v13  ;;  %v3607_v2 = vadd.f32 %v1110_v9, %v3552_v3  ;;  %v1290_v29 = vmul.f32 %v1258_v39, %v1162_v24 }
 0x2a7   : > { %v1114_v38 = vpop.f32.mrf.mxu1  ;;  %v1259_v30 = vadd.f32 1.0, %v2575_v23  ;;  %v2577_v41 = vpop.eup %2576  ;;  %v1170_v48 = vmul.f32 0.5, %v3597_v50  ;;  %v1169_v24 = vmul.f32 0.5, %v3593_v15 }
 0x2a8   : > { %2590 = verf.f32 %v1203_v26  ;;  %v1204_v44 = vmul.f32 0.70710677, %v3607_v2  ;;  %v3611_v27 = vadd.f32 %v1114_v38, %v3548_v0  ;;  %1433 = vmatprep.mubr.f32.mxu0 %v1290_v29  ;;  %v1260_v35 = vadd.f32 1.0, %v2577_v41 }
 0x2a9   : > { %v2579_v32 = vpop.eup %2578  ;;  %v1116_v52 = vpop.f32.mrf.mxu1  ;;  %1434 = vmatmul.mubr.f32.gmra.mxu0 %v1289_v47  ;;  %v1291_v53 = vmul.f32 %v1259_v30, %v1163_v25  ;;  %v1172_v26 = vmul.f32 0.5, %v3607_v2  ;;  %v1171_v47 = vmul.f32 0.5, %v3601_v13 }
 0x2aa   : > { %2592 = verf.f32 %v1204_v44  ;;  %v1205_v22 = vmul.f32 0.70710677, %v3611_v27  ;;  %v3617_v11 = vadd.f32 %v1116_v52, %v3552_v3  ;;  %v1292_v56 = vmul.f32 %v1260_v35, %v1164_v51 }
 0x2ab   : > { %v2581_v43 = vpop.eup %2580  ;;  %v1120_v54 = vpop.f32.mrf.mxu1  ;;  %v1261_v42 = vadd.f32 1.0, %v2579_v32 }
 0x2ac   : > { %2594 = verf.f32 %v1205_v22  ;;  %v1206_v57 = vmul.f32 0.70710677, %v3617_v11  ;;  %v3621_v40 = vadd.f32 %v1120_v54, %v3548_v0  ;;  %1438 = vmatprep.mubr.f32.mxu0 %v1292_v56  ;;  %v1262_v58 = vadd.f32 1.0, %v2581_v43 }
 0x2ad   : > { %v2583_v62 = vpop.eup %2582  ;;  %v1122_v61 = vpop.f32.mrf.mxu1  ;;  %1439 = vmatmul.mubr.f32.gmra.mxu0 %v1291_v53  ;;  %v1293_v34 = vmul.f32 %v1261_v42, %v1165_v4 }
 0x2ae   : > { %2596 = verf.f32 %v1206_v57  ;;  %v1207_v5 = vmul.f32 0.70710677, %v3621_v40  ;;  %v3627_v31 = vadd.f32 %v1122_v61, %v3552_v3  ;;  %v1294_v8 = vmul.f32 %v1262_v58, %v1166_v63 }
 0x2af   : > { %v2585_v21 = vpop.eup %2584  ;;  %v1126_v7 = vpop.f32.mrf.mxu1  ;;  %v1263_v10 = vadd.f32 1.0, %v2583_v62  ;;  %v1174_v57 = vmul.f32 0.5, %v3617_v11  ;;  %v1173_v63 = vmul.f32 0.5, %v3611_v27 }
 0x2b0   : > { %2598 = verf.f32 %v1207_v5  ;;  %v1208_v33 = vmul.f32 0.70710677, %v3627_v31  ;;  %v3631_v55 = vadd.f32 %v1126_v7, %v3548_v0  ;;  %1443 = vmatprep.mubr.f32.mxu0 %v1294_v8  ;;  %v1264_v17 = vadd.f32 1.0, %v2585_v21 }
 0x2b1   : > { %v2587_v14 = vpop.eup %2586  ;;  %v1128_v59 = vpop.f32.mrf.mxu1  ;;  %1444 = vmatmul.mubr.f32.gmra.mxu0 %v1293_v34  ;;  %v1295_v46 = vmul.f32 %v1263_v10, %v1167_v12  ;;  %v1175_v34 = vmul.f32 0.5, %v3621_v40 }
 0x2b2   : > { %2600 = verf.f32 %v1208_v33  ;;  %v1209_v16 = vmul.f32 0.70710677, %v3631_v55  ;;  %v3637_v60 = vadd.f32 %v1128_v59, %v3552_v3  ;;  %v1296_v19 = vmul.f32 %v1264_v17, %v1168_v49 }
 0x2b3   : > { %v2589_v18 = vpop.eup %2588  ;;  %v1132_v36 = vpop.f32.mrf.mxu1  ;;  %v1265_v6 = vadd.f32 1.0, %v2587_v14  ;;  %v1176_v14 = vmul.f32 0.5, %v3627_v31  ;;  %v1177_v31 = vmul.f32 0.5, %v3631_v55 }
 0x2b4   : > { %2602 = verf.f32 %v1209_v16  ;;  %v1210_v20 = vmul.f32 0.70710677, %v3637_v60  ;;  %v3641_v1 = vadd.f32 %v1132_v36, %v3548_v0  ;;  %1448 = vmatprep.mubr.f32.mxu0 %v1296_v19  ;;  %v1266_v23 = vadd.f32 1.0, %v2589_v18 }
 0x2b5   : > { %v2591_v45 = vpop.eup %2590  ;;  %v1134_v37 = vpop.f32.mrf.mxu1  ;;  %1449 = vmatmul.mubr.f32.gmra.mxu0 %v1295_v46  ;;  %v1297_v41 = vmul.f32 %v1265_v6, %v1169_v24  ;;  %v1178_v16 = vmul.f32 0.5, %v3637_v60 }
 0x2b6   : > { %2604 = verf.f32 %v1210_v20  ;;  %v1211_v9 = vmul.f32 0.70710677, %v3641_v1  ;;  %v1267_v28 = vadd.f32 1.0, %v2591_v45  ;;  %v3648_v38 = vadd.f32 %v1134_v37, %v3552_v3 }
 0x2b7   : > { %v2593_v39 = vpop.eup %2592  ;;  %v1138_v29 = vpop.f32.mrf.mxu1  ;;  %v1298_v30 = vmul.f32 %v1266_v23, %v1170_v48  ;;  %v1179_v23 = vmul.f32 0.5, %v3641_v1 }
 0x2b8   : > { %2606 = verf.f32 %v1211_v9  ;;  %v3651_v50 = vadd.f32 %v1138_v29, %v3548_v0  ;;  %v1268_v44 = vadd.f32 1.0, %v2593_v39  ;;  %v1212_v32 = vmul.f32 0.70710677, %v3648_v38 }
 0x2b9   : > { %v2595_v15 = vpop.eup %2594  ;;  %1453 = vmatprep.mubr.f32.mxu0 %v1298_v30  ;;  %v1140_v25 = vpop.f32.mrf.mxu1  ;;  %v1299_v22 = vmul.f32 %v1267_v28, %v1171_v47  ;;  %v1180_v60 = vmul.f32 0.5, %v3648_v38 }
 0x2ba   : > { %v1213_v2 = vmul.f32 0.70710677, %v3651_v50  ;;  %v3657_v51 = vadd.f32 %v1140_v25, %v3552_v3  ;;  %1454 = vmatmul.mubr.f32.gmra.mxu0 %v1297_v41  ;;  %v1300_v52 = vmul.f32 %v1268_v44, %v1172_v26  ;;  %2608 = verf.f32 %v1212_v32 }
 0x2bb   : > { %v2597_v35 = vpop.eup %2596  ;;  %v1144_v43 = vpop.f32.mrf.mxu1  ;;  %v1269_v56 = vadd.f32 1.0, %v2595_v15  ;;  %v1181_v30 = vmul.f32 0.5, %v3651_v50 }
 0x2bc   : > { %2610 = verf.f32 %v1213_v2  ;;  %v1214_v54 = vmul.f32 0.70710677, %v3657_v51  ;;  %v3661_v13 = vadd.f32 %v1144_v43, %v3548_v0  ;;  %1458 = vmatprep.mubr.f32.mxu1 %v1300_v52  ;;  %v1270_v62 = vadd.f32 1.0, %v2597_v35 }
 0x2bd   : > { %v2599_v53 = vpop.eup %2598  ;;  %v1146_v42 = vpop.f32.mrf.mxu1  ;;  %1459 = vmatmul.mubr.f32.vlgmr.msra.gmra.mxu1 %v1299_v22  ;;  %v1301_v33 = vmul.f32 %v1269_v56, %v1173_v63  ;;  %v1182_v39 = vmul.f32 0.5, %v3657_v51 }
 0x2be   : > { %2612 = verf.f32 %v1214_v54  ;;  %v1215_v61 = vmul.f32 0.70710677, %v3661_v13  ;;  %v1147_v58 = vadd.f32 %v1146_v42, %v3552_v3  ;;  %v1302_v21 = vmul.f32 %v1270_v62, %v1174_v57 }
 0x2bf   : > { %v2601_v4 = vpop.eup %2600  ;;  %v1150_v5 = vpop.f32.mrf.mxu1  ;;  %v1271_v7 = vadd.f32 1.0, %v2599_v53  ;;  %v1183_v25 = vmul.f32 0.5, %v3661_v13  ;;  %v3681_v13 = vld [vmem:[%s4046_s4] ss:$0 sm:$0xff] }
 0x2c0   : > { %2614 = verf.f32 %v1215_v61  ;;  %v1216_v8 = vmul.f32 0.70710677, %v1147_v58  ;;  %v1151_v10 = vadd.f32 %v1150_v5, %v3548_v0  ;;  %1463 = vmatprep.mubr.f32.mxu1 %v1302_v21  ;;  %v1272_v12 = vadd.f32 1.0, %v2601_v4 }
 0x2c1   : > { %v2603_v11 = vpop.eup %2602  ;;  %v1152_v27 = vpop.f32.mrf.mxu1  ;;  %1464 = vmatmul.mubr.f32.gmra.mxu1 %v1301_v33  ;;  %v1303_v36 = vmul.f32 %v1271_v7, %v1175_v34  ;;  %v1184_v15 = vmul.f32 0.5, %v1147_v58 }
 0x2c2   : > { %2616 = verf.f32 %v1216_v8  ;;  %v1217_v49 = vmul.f32 0.70710677, %v1151_v10  ;;  %v1153_v59 = vadd.f32 %v1152_v27, %v3552_v3  ;;  %v1304_v18 = vmul.f32 %v1272_v12, %v1176_v14 }
 0x2c3   : > { %v2605_v17 = vpop.eup %2604  ;;  %v1273_v46 = vadd.f32 1.0, %v2603_v11  ;;  %v1185_v50 = vmul.f32 0.5, %v1151_v10 }
 0x2c4   : > { %2618 = verf.f32 %v1217_v49  ;;  %v1218_v0 = vmul.f32 0.70710677, %v1153_v59  ;;  %v1274_v19 = vadd.f32 1.0, %v2605_v17  ;;  %1468 = vmatprep.mubr.f32.mxu1 %v1304_v18  ;;  %v1186_v52 = vmul.f32 0.5, %v1153_v59 }
 0x2c5   : > { %v2607_v40 = vpop.eup %2606  ;;  %1469 = vmatmul.mubr.f32.gmra.mxu1 %v1303_v36  ;;  %v1305_v3 = vmul.f32 %v1273_v46, %v1177_v31 }
 0x2c6   : > { %2620 = verf.f32 %v1218_v0  ;;  %v1306_v20 = vmul.f32 %v1274_v19, %v1178_v16  ;;  %v1275_v45 = vadd.f32 1.0, %v2607_v40 }
 0x2c7   : > { %v2609_v6 = vpop.eup %2608 }
 0x2c8   : > { %1473 = vmatprep.mubr.f32.mxu1 %v1306_v20  ;;  %v1276_v37 = vadd.f32 1.0, %v2609_v6  ;;  %v1307_v28 = vmul.f32 %v1275_v45, %v1179_v23 }
 0x2c9   : > { %v2611_v48 = vpop.eup %2610  ;;  %1474 = vmatmul.mubr.f32.gmra.mxu1 %v1305_v3 }
 0x2ca   : > { %v1308_v9 = vmul.f32 %v1276_v37, %v1180_v60  ;;  %v1277_v26 = vadd.f32 1.0, %v2611_v48 }
 0x2cb   : > { %v2613_v24 = vpop.eup %2612 }
 0x2cc   : > { %v1278_v55 = vadd.f32 1.0, %v2613_v24  ;;  %1478 = vmatprep.mubr.f32.mxu1 %v1308_v9  ;;  %v1309_v38 = vmul.f32 %v1277_v26, %v1181_v30 }
 0x2cd   : > { %v2615_v29 = vpop.eup %2614  ;;  %1479 = vmatmul.mubr.f32.gmra.mxu1 %v1307_v28 }
 0x2ce   : > { %v1310_v41 = vmul.f32 %v1278_v55, %v1182_v39  ;;  %v1279_v1 = vadd.f32 1.0, %v2615_v29 }
 0x2cf   : > { %v2617_v44 = vpop.eup %2616 }
 0x2d0   : > { %1483 = vmatprep.mubr.f32.mxu1 %v1310_v41  ;;  %v1280_v47 = vadd.f32 1.0, %v2617_v44  ;;  %v1311_v35 = vmul.f32 %v1279_v1, %v1183_v25 }
 0x2d1   : > { %v2619_v32 = vpop.eup %2618  ;;  %1484 = vmatmul.mubr.f32.gmra.mxu1 %v1309_v38 }
 0x2d2   : > { %v1312_v2 = vmul.f32 %v1280_v47, %v1184_v15  ;;  %v1281_v43 = vadd.f32 1.0, %v2619_v32 }
 0x2d3   : > { %v2621_v51 = vpop.eup %2620 }
 0x2d4   : > { %1488 = vmatprep.mubr.f32.mxu1 %v1312_v2  ;;  %v1282_v22 = vadd.f32 1.0, %v2621_v51  ;;  %v1313_v56 = vmul.f32 %v1281_v43, %v1185_v50 }
 0x2d5   : > { %1489 = vmatmul.mubr.f32.gmra.mxu1 %v1311_v35 }
 0x2d6   : > { %v1314_v54 = vmul.f32 %v1282_v22, %v1186_v52 }
 0x2d8   : > { %1493 = vmatprep.mubr.f32.mxu1 %v1314_v54 }
 0x2d9   : > { %1494 = vmatmul.mubr.f32.gmra.mxu1 %v1313_v56 }
 0x35d   : > { %v2139_v53 = vpop.f32.mrf.mxu0 }
 0x35f   : > { %v2140_v57 = vpop.f32.mrf.mxu0 }
 0x360   : > { %v2141_v42 = vadd.f32 %v2140_v57, %v2139_v53 }
 0x361   : > { %v2142_v62 = vpop.f32.mrf.mxu0 }
 0x362   : > { %v3684_v63 = vadd.f32 %v2141_v42, %v3681_v13 }
 0x363   : > { %v2143_v61 = vpop.f32.mrf.mxu0 }
 0x364   : > { %v1499_v58 = vmul.f32 %v3684_v63, %v3684_v63  ;;  %v2144_v4 = vadd.f32 %v2143_v61, %v2142_v62 }
 0x365   : > { %v2145_v5 = vpop.f32.mrf.mxu0 }
 0x366   : > { %1515 = vadd.xlane.f32.xlu0 %v1499_v58  ;;  %v3689_v21 = vadd.f32 %v2144_v4, %v3681_v13 }
 0x367   : > { %v2146_v7 = vpop.f32.mrf.mxu0 }
 0x368   : > { %v2147_v8 = vadd.f32 %v2146_v7, %v2145_v5  ;;  %v1500_v10 = vmul.f32 %v3689_v21, %v3689_v21 }
 0x369   : > { %v2148_v33 = vpop.f32.mrf.mxu0 }
 0x36a   : > { %1517 = vadd.xlane.f32.xlu0 %v1500_v10  ;;  %v3694_v11 = vadd.f32 %v2147_v8, %v3681_v13 }
 0x36b   : > { %v2149_v34 = vpop.f32.mrf.mxu0 }
 0x36c   : > { %v2150_v14 = vadd.f32 %v2149_v34, %v2148_v33  ;;  %v1501_v27 = vmul.f32 %v3694_v11, %v3694_v11 }
 0x36d   : > { %v2151_v12 = vpop.f32.mrf.mxu0 }
 0x36e   : > { %v3699_v49 = vadd.f32 %v2150_v14, %v3681_v13  ;;  %1519 = vadd.xlane.f32.xlu1 %v1501_v27 }
 0x36f   : > { %v2152_v59 = vpop.f32.mrf.mxu0 }
 0x370   : > { %v2153_v17 = vadd.f32 %v2152_v59, %v2151_v12  ;;  %v1502_v16 = vmul.f32 %v3699_v49, %v3699_v49 }
 0x371   : > { %v2154_v18 = vpop.f32.mrf.mxu0 }
 0x372   : > { %v3704_v36 = vadd.f32 %v2153_v17, %v3681_v13  ;;  %1521 = vadd.xlane.f32.xlu1 %v1502_v16 }
 0x373   : > { %v2155_v0 = vpop.f32.mrf.mxu0 }
 0x374   : > { %v2156_v19 = vadd.f32 %v2155_v0, %v2154_v18  ;;  %v1503_v46 = vmul.f32 %v3704_v36, %v3704_v36 }
 0x375   : > { %v2157_v40 = vpop.f32.mrf.mxu0 }
 0x376   : > { %v3709_v31 = vadd.f32 %v2156_v19, %v3681_v13  ;;  %1523 = vadd.xlane.f32.xlu0 %v1503_v46 }
 0x377   : > { %v2158_v20 = vpop.f32.mrf.mxu0 }
 0x378   : > { %v2159_v6 = vadd.f32 %v2158_v20, %v2157_v40  ;;  %v1504_v3 = vmul.f32 %v3709_v31, %v3709_v31 }
 0x37a   : > { %v2160_v45 = vpop.f32.mrf.mxu0  ;;  %v3714_v48 = vadd.f32 %v2159_v6, %v3681_v13  ;;  %1525 = vadd.xlane.f32.xlu1 %v1504_v3 }
 0x37c   : > { %v2161_v60 = vpop.f32.mrf.mxu0  ;;  %v1505_v24 = vmul.f32 %v3714_v48, %v3714_v48 }
 0x37d   : > { %v2162_v37 = vadd.f32 %v2161_v60, %v2160_v45  ;;  %v2163_v23 = vpop.f32.mrf.mxu1 }
 0x37e   : > { %1527 = vadd.xlane.f32.xlu0 %v1505_v24 }
 0x37f   : > { %v3719_v9 = vadd.f32 %v2162_v37, %v3681_v13  ;;  %v2164_v39 = vpop.f32.mrf.mxu1 }
 0x380   : > { %v2165_v28 = vadd.f32 %v2164_v39, %v2163_v23 }
 0x381   : > { %v1506_v55 = vmul.f32 %v3719_v9, %v3719_v9  ;;  %v2166_v29 = vpop.f32.mrf.mxu1 }
 0x382   : > { %v3724_v26 = vadd.f32 %v2165_v28, %v3681_v13 }
 0x383   : > { %1529 = vadd.xlane.f32.xlu1 %v1506_v55  ;;  %v2167_v30 = vpop.f32.mrf.mxu1 }
 0x384   : > { %v1507_v41 = vmul.f32 %v3724_v26, %v3724_v26  ;;  %v2168_v44 = vadd.f32 %v2167_v30, %v2166_v29 }
 0x385   : > { %v2169_v15 = vpop.f32.mrf.mxu1 }
 0x386   : > { %1531 = vadd.xlane.f32.xlu0 %v1507_v41  ;;  %v3729_v38 = vadd.f32 %v2168_v44, %v3681_v13 }
 0x387   : > { %v2170_v47 = vpop.f32.mrf.mxu1 }
 0x388   : > { %v2171_v1 = vadd.f32 %v2170_v47, %v2169_v15  ;;  %v1508_v32 = vmul.f32 %v3729_v38, %v3729_v38 }
 0x389   : > { %v2172_v25 = vpop.f32.mrf.mxu1 }
 0x38a   : > { %v3734_v2 = vadd.f32 %v2171_v1, %v3681_v13  ;;  %1533 = vadd.xlane.f32.xlu1 %v1508_v32 }
 0x38b   : > { %v2173_v51 = vpop.f32.mrf.mxu1 }
 0x38c   : > { %v2174_v52 = vadd.f32 %v2173_v51, %v2172_v25  ;;  %v1509_v35 = vmul.f32 %v3734_v2, %v3734_v2 }
 0x38d   : > { %v2175_v22 = vpop.f32.mrf.mxu1 }
 0x38e   : > { %v3739_v43 = vadd.f32 %v2174_v52, %v3681_v13  ;;  %1535 = vadd.xlane.f32.xlu0 %v1509_v35 }
 0x38f   : > { %v2176_v50 = vpop.f32.mrf.mxu1 }
 0x390   : > { %v2177_v54 = vadd.f32 %v2176_v50, %v2175_v22  ;;  %v1510_v56 = vmul.f32 %v3739_v43, %v3739_v43 }
 0x391   : > { %v2178_v53 = vpop.f32.mrf.mxu1 }
 0x392   : > { %v3744_v57 = vadd.f32 %v2177_v54, %v3681_v13  ;;  %1537 = vadd.xlane.f32.xlu1 %v1510_v56 }
 0x393   : > { %v2179_v42 = vpop.f32.mrf.mxu1 }
 0x394   : > { %v2180_v62 = vadd.f32 %v2179_v42, %v2178_v53  ;;  %v1511_v61 = vmul.f32 %v3744_v57, %v3744_v57 }
 0x395   : > { %v2181_v58 = vpop.f32.mrf.mxu1 }
 0x396   : > { %v3749_v4 = vadd.f32 %v2180_v62, %v3681_v13  ;;  %1539 = vadd.xlane.f32.xlu0 %v1511_v61 }
 0x397   : > { %v2182_v5 = vpop.f32.mrf.mxu1 }
 0x398   : > { %v2183_v7 = vadd.f32 %v2182_v5, %v2181_v58  ;;  %v1512_v8 = vmul.f32 %v3749_v4, %v3749_v4 }
 0x399   : > { %v2184_v10 = vpop.f32.mrf.mxu1 }
 0x39a   : > { %v3754_v33 = vadd.f32 %v2183_v7, %v3681_v13  ;;  %1541 = vadd.xlane.f32.xlu1 %v1512_v8 }
 0x39b   : > { %v2185_v34 = vpop.f32.mrf.mxu1 }
 0x39c   : > { %v2186_v14 = vadd.f32 %v2185_v34, %v2184_v10  ;;  %v1513_v27 = vmul.f32 %v3754_v33, %v3754_v33 }
 0x39e   : > { %v3759_v12 = vadd.f32 %v2186_v14, %v3681_v13  ;;  %1543 = vadd.xlane.f32.xlu0 %v1513_v27 }
 0x3a0   : > { %v1514_v59 = vmul.f32 %v3759_v12, %v3759_v12 }
 0x3a2   : > { %1545 = vadd.xlane.f32.xlu1 %v1514_v59 }
 0x3ef   : > { %v1516_v17 = vpop.xlane.xlu0 %1515 }
 0x3f0   : > { %v1547_v16 = vmax.f32 %v1516_v17, 1e-24 }
 0x3f2   : > { %2622 = vrsqrt.f32 %v1547_v16 }
 0x3f3   : > { %v1518_v18 = vpop.xlane.xlu0 %1517 }
 0x3f4   : > { %v1548_v0 = vmax.f32 %v1518_v18, 1e-24 }
 0x3f6   : > { %2624 = vrsqrt.f32 %v1548_v0 }
 0x3f7   : > { %v1520_v19 = vpop.xlane.xlu1 %1519 }
 0x3f8   : > { %v1549_v46 = vmax.f32 %v1520_v19, 1e-24 }
 0x3fa   : > { %2626 = vrsqrt.f32 %v1549_v46 }
 0x3fb   : > { %v1522_v40 = vpop.xlane.xlu1 %1521 }
 0x3fc   : > { %v1550_v20 = vmax.f32 %v1522_v40, 1e-24 }
 0x3fe   : > { %2628 = vrsqrt.f32 %v1550_v20 }
 0x3ff   : > { %v2623_v6 = vpop.eup %2622  ;;  %v1524_v3 = vpop.xlane.xlu0 %1523 }
 0x400   : > { %v1579_v13 = vmul.f32 %v2623_v6, %v3684_v63  ;;  %v1551_v45 = vmax.f32 %v1524_v3, 1e-24 }
 0x402   : > { %1595 = vst [vmem:[#allocation2 + $0x30] sm:$0xff] %v1579_v13  ;;  %2630 = vrsqrt.f32 %v1551_v45 }
 0x403   : > { %v2625_v60 = vpop.eup %2624  ;;  %v1526_v37 = vpop.xlane.xlu1 %1525 }
 0x404   : > { %v1580_v23 = vmul.f32 %v2625_v60, %v3689_v21  ;;  %v1552_v24 = vmax.f32 %v1526_v37, 1e-24 }
 0x406   : > { %1596 = vst [vmem:[#allocation2] sm:$0xff] %v1580_v23  ;;  %2632 = vrsqrt.f32 %v1552_v24 }
 0x407   : > { %v2627_v39 = vpop.eup %2626  ;;  %v1528_v28 = vpop.xlane.xlu0 %1527 }
 0x408   : > { %v1581_v55 = vmul.f32 %v2627_v39, %v3694_v11  ;;  %v1553_v29 = vmax.f32 %v1528_v28, 1e-24 }
 0x40a   : > { %1597 = vst [vmem:[#allocation2 + $0x58] sm:$0xff] %v1581_v55  ;;  %2634 = vrsqrt.f32 %v1553_v29 }
 0x40b   : > { %v2629_v30 = vpop.eup %2628 }
 0x40c   : > { %v1530_v63 = vpop.xlane.xlu1 %1529  ;;  %v1582_v41 = vmul.f32 %v2629_v30, %v3699_v49 }
 0x40d   : > { %v1554_v44 = vmax.f32 %v1530_v63, 1e-24 }
 0x40e   : > { %1598 = vst [vmem:[#allocation2 + $0x18] sm:$0xff] %v1582_v41 }
 0x40f   : > { %2636 = vrsqrt.f32 %v1554_v44  ;;  %v1532_v15 = vpop.xlane.xlu0 %1531  ;;  %v2631_v47 = vpop.eup %2630 }
 0x410   : > { %v1555_v21 = vmax.f32 %v1532_v15, 1e-24  ;;  %v1583_v1 = vmul.f32 %v2631_v47, %v3704_v36 }
 0x412   : > { %2638 = vrsqrt.f32 %v1555_v21  ;;  %1599 = vst [vmem:[#allocation2 + $0x50] sm:$0xff] %v1583_v1 }
 0x413   : > { %v2633_v32 = vpop.eup %2632  ;;  %v1534_v25 = vpop.xlane.xlu1 %1533 }
 0x414   : > { %v1584_v11 = vmul.f32 %v2633_v32, %v3709_v31  ;;  %v1556_v51 = vmax.f32 %v1534_v25, 1e-24 }
 0x416   : > { %1600 = vst [vmem:[#allocation2 + $0x68] sm:$0xff] %v1584_v11  ;;  %2640 = vrsqrt.f32 %v1556_v51 }
 0x417   : > { %v2635_v52 = vpop.eup %2634  ;;  %v1536_v35 = vpop.xlane.xlu0 %1535 }
 0x418   : > { %v1585_v49 = vmul.f32 %v2635_v52, %v3714_v48  ;;  %v1557_v22 = vmax.f32 %v1536_v35, 1e-24 }
 0x41a   : > { %1601 = vst [vmem:[#allocation2 + $0x8] sm:$0xff] %v1585_v49  ;;  %2642 = vrsqrt.f32 %v1557_v22 }
 0x41b   : > { %v1538_v54 = vpop.xlane.xlu1 %1537 }
 0x41c   : > { %v2637_v50 = vpop.eup %2636  ;;  %v1558_v56 = vmax.f32 %v1538_v54, 1e-24 }
 0x41d   : > { %v1586_v36 = vmul.f32 %v2637_v50, %v3719_v9 }
 0x41e   : > { %2644 = vrsqrt.f32 %v1558_v56 }
 0x41f   : > { %v2639_v53 = vpop.eup %2638  ;;  %1602 = vst [vmem:[#allocation2 + $0x48] sm:$0xff] %v1586_v36  ;;  %v1540_v42 = vpop.xlane.xlu0 %1539 }
 0x420   : > { %v1587_v31 = vmul.f32 %v2639_v53, %v3724_v26  ;;  %v1559_v62 = vmax.f32 %v1540_v42, 1e-24 }
 0x422   : > { %1603 = vst [vmem:[#allocation2 + $0x40] sm:$0xff] %v1587_v31  ;;  %2646 = vrsqrt.f32 %v1559_v62 }
 0x423   : > { %v2641_v61 = vpop.eup %2640  ;;  %v1542_v58 = vpop.xlane.xlu1 %1541 }
 0x424   : > { %v1588_v48 = vmul.f32 %v2641_v61, %v3729_v38  ;;  %v1560_v5 = vmax.f32 %v1542_v58, 1e-24 }
 0x426   : > { %1604 = vst [vmem:[#allocation2 + $0x20] sm:$0xff] %v1588_v48  ;;  %2648 = vrsqrt.f32 %v1560_v5 }
 0x427   : > { %v2643_v7 = vpop.eup %2642  ;;  %v1544_v8 = vpop.xlane.xlu0 %1543 }
 0x428   : > { %v1589_v9 = vmul.f32 %v2643_v7, %v3734_v2  ;;  %v1561_v10 = vmax.f32 %v1544_v8, 1e-24 }
 0x42a   : > { %1605 = vst [vmem:[#allocation2 + $0x10] sm:$0xff] %v1589_v9  ;;  %2650 = vrsqrt.f32 %v1561_v10 }
 0x42b   : > { %v2645_v34 = vpop.eup %2644  ;;  %v1546_v26 = vpop.xlane.xlu1 %1545 }
 0x42c   : > { %v1590_v14 = vmul.f32 %v2645_v34, %v3739_v43  ;;  %v1562_v27 = vmax.f32 %v1546_v26, 1e-24 }
 0x42e   : > { %1606 = vst [vmem:[#allocation2 + $0x38] sm:$0xff] %v1590_v14  ;;  %2652 = vrsqrt.f32 %v1562_v27 }
 0x42f   : > { %v2647_v59 = vpop.eup %2646 }
 0x430   : > { %v1591_v38 = vmul.f32 %v2647_v59, %v3744_v57 }
 0x432   : > { %1607 = vst [vmem:[#allocation2 + $0x60] sm:$0xff] %v1591_v38 }
 0x433   : > { %v2649_v17 = vpop.eup %2648 }
 0x434   : > { %v1592_v16 = vmul.f32 %v2649_v17, %v3749_v4 }
 0x436   : > { %1608 = vst [vmem:[#allocation2 + $0x70] sm:$0xff] %v1592_v16 }
 0x437   : > { %v2651_v18 = vpop.eup %2650 }
 0x438   : > { %v1593_v2 = vmul.f32 %v2651_v18, %v3754_v33 }
 0x43a   : > { %1609 = vst [vmem:[#allocation2 + $0x78] sm:$0xff] %v1593_v2 }
 0x43b   : > { %v2653_v0 = vpop.eup %2652 }
 0x43c   : > { %v1594_v19 = vmul.f32 %v2653_v0, %v3759_v12 }
 0x43e   : > { %1610 = vst [vmem:[#allocation2 + $0x28] sm:$0xff] %v1594_v19 }
 0x43f PF: > { %v1658_v43 = vld [vmem:[%s3308_s1 + $0xf8] sm:$0xff]  ;;  %v1657_v4 = vld [vmem:[%s3308_s1 + $0xf0] sm:$0xff]  ;;  %v1656_v12 = vld [vmem:[%s3308_s1 + $0xe8] sm:$0xff]  ;;  %v1822_v7 = vlaneseq  ;;  %s4048_s26 = sld [smem:[#allocation21_spill]]  ;;  %s3904_s21 = scalar_lea.sflag [#allocation5], %s473_s29 }
 0x440   : > { %v1642_v57 = vld [vmem:[%s3308_s1 + $0x78] sm:$0xff]  ;;  %2187 = vmatprep.subr.mxu0 %v1658_v43  ;;  %2283 = vmatprep.subr.mxu1 %v1658_v43  ;;  %v1641_v33 = vld [vmem:[%s3308_s1 + $0x70] sm:$0xff]  ;;  %v1640_v46 = vld [vmem:[%s3308_s1 + $0x68] sm:$0xff]  ;;  %s4049_s27 = sld [smem:[#allocation34_spill]]  ;;  %p4050_p0 = scmp.ne.s32.totalorder %s4034_s8, 0 }
 0x441   : > { %2188 = vmatpush3.xpose.msra.mxu0 %v1642_v57  ;;  %2299 = vmatpush3.xpose.msra.mxu1 %v1642_v57  ;;  %v1655_v40 = vld [vmem:[%s3308_s1 + $0xe0] sm:$0xff]  ;;  %v3786_v20 = vld [vmem:[#allocation2 + $0x30] sm:$0xff]  ;;  %v1654_v3 = vld [vmem:[%s3308_s1 + $0xd8] sm:$0xff]  ;;  %v1823_v8 = vshrl.u32 %v1822_v7, 7  ;;  %s2982_s4 = smov [#allocation14]  }
 0x442   : > { %2189 = vmatprep.subr.mxu0 %v1657_v4  ;;  %2284 = vmatprep.subr.mxu1 %v1657_v4  ;;  %v1639_v6 = vld [vmem:[%s3308_s1 + $0x60] sm:$0xff]  ;;  %v1638_v45 = vld [vmem:[%s3308_s1 + $0x58] sm:$0xff]  ;;  %v1653_v60 = vld [vmem:[%s3308_s1 + $0xd0] sm:$0xff] }
 0x443   : > { %v3789_v13 = vld [vmem:[#allocation2 + $0x40] sm:$0xff]  ;;  %2219 = vmatprep.mubr.f32.mxu0 %v3786_v20  ;;  %v1637_v37 = vld [vmem:[%s3308_s1 + $0x50] sm:$0xff]  ;;  %v1652_v23 = vld [vmem:[%s3308_s1 + $0xc8] sm:$0xff]  ;;  %v1824_v9 = vsub.s32 0, %v1823_v8  ;;  %v1828_v34 = vsub.s32 1, %v1823_v8 }
 0x444   : > { %2235 = vmatprep.mubr.f32.mxu1 %v3789_v13  ;;  %v1636_v24 = vld [vmem:[%s3308_s1 + $0x48] sm:$0xff]  ;;  %v1651_v39 = vld [vmem:[%s3308_s1 + $0xc0] sm:$0xff]  ;;  %v1650_v55 = vld [vmem:[%s3308_s1 + $0xb8] sm:$0xff] }
 0x445   : > { %2190 = vmatpush3.xpose.msra.mxu0 %v1641_v33  ;;  %2300 = vmatpush3.xpose.msra.mxu1 %v1641_v33  ;;  %v1635_v28 = vld [vmem:[%s3308_s1 + $0x40] sm:$0xff]  ;;  %v1634_v29 = vld [vmem:[%s3308_s1 + $0x38] sm:$0xff]  ;;  %v1649_v30 = vld [vmem:[%s3308_s1 + $0xb0] sm:$0xff]  ;;  %s2106_s18 = sshll.u32 %s4048_s26, 6 }
 0x446   : > { %2191 = vmatprep.subr.mxu0 %v1656_v12  ;;  %2285 = vmatprep.subr.mxu1 %v1656_v12  ;;  %v1633_v63 = vld [vmem:[%s3308_s1 + $0x30] sm:$0xff]  ;;  %v1648_v41 = vld [vmem:[%s3308_s1 + $0xa8] sm:$0xff]  ;;  %v1647_v15 = vld [vmem:[%s3308_s1 + $0xa0] sm:$0xff]  ;;  %s1910_s5 = sadd.s32 %s2106_s18, %s3316_s3  ;;  %s1913_s3 = sshll.u32 %s3328_s12, 4  ;;  %s3894_s3 = int_to_ptr.vmem [resolvable:$true] %s1913_s3 }
 0x447   : > { %v1632_v44 = vld [vmem:[%s3308_s1 + $0x28] sm:$0xff]  ;;  %v1631_v47 = vld [vmem:[%s3308_s1 + $0x20] sm:$0xff]  ;;  %v1646_v21 = vld [vmem:[%s3308_s1 + $0x98] sm:$0xff]  ;;  %s2100_s15 = sshll.u32 %s1910_s5, 7  ;;  %s2814_s25 = scalar_lea.vmem %s3894_s3, 4096 }
 0x448   : > { %v1630_v1 = vld [vmem:[%s3308_s1 + $0x18] sm:$0xff]  ;;  %v1645_v32 = vld [vmem:[%s3308_s1 + $0x90] sm:$0xff]  ;;  %v1644_v11 = vld [vmem:[%s3308_s1 + $0x88] sm:$0xff]  ;;  %s3892_s23 = scalar_lea.hbm %s4049_s27, %s2100_s15  ;;  %p2815_p10 = scmp.ne.s32.totalorder %s3894_s3, %s2814_s25 }
 0x449   : > { %2192 = vmatpush3.xpose.msra.mxu0 %v1640_v46  ;;  %2301 = vmatpush3.xpose.msra.mxu1 %v1640_v46  ;;  %v1629_v25 = vld [vmem:[%s3308_s1 + $0x10] sm:$0xff]  ;;  %v1628_v51 = vld [vmem:[%s3308_s1 + $0x8] sm:$0xff]  ;;  %v1643_v52 = vld [vmem:[%s3308_s1 + $0x80] sm:$0xff] }
 0x44a   : > { %2193 = vmatprep.subr.mxu0 %v1655_v40  ;;  %2286 = vmatprep.subr.mxu1 %v1655_v40  ;;  %v1627_v35 = vld [vmem:[%s3308_s1] sm:$0xff]  ;;  %v1613_v50 = vld [vmem:[#allocation2 + $0x58] sm:$0xff]  ;;  %v1621_v54 = vld [vmem:[#allocation2 + $0x10] sm:$0xff]  ;;  %p2816_p7 = pnand %p2815_p10, %p4050_p0  ;;  %s2818_s1 = sshll.u32 %s2982_s4, 4  ;;  %s2819_s1 = int_to_ptr.vmem [resolvable:$false] %s2818_s1 }
 0x44b   : > { %v1612_v49 = vld [vmem:[#allocation2] sm:$0xff]  ;;  %v1614_v36 = vld [vmem:[#allocation2 + $0x18] sm:$0xff]  ;;  %v1615_v53 = vld [vmem:[#allocation2 + $0x50] sm:$0xff]  ;;  %s2820_s6 = scalar_lea.vmem %s2819_s1, 8192  ;;  %p2821_p2 = scmp.lt.s32.totalorder %s3894_s3, %s2819_s1 }
 0x44c   : > { %v1620_v22 = vld [vmem:[#allocation2 + $0x20] sm:$0xff]  ;;  %v1622_v56 = vld [vmem:[#allocation2 + $0x38] sm:$0xff]  ;;  %v1616_v42 = vld [vmem:[#allocation2 + $0x68] sm:$0xff]  ;;  %p2817_p6 = pneg %p2816_p7  ;;  %p2822_p9 = scmp.lt.s32.totalorder %s2820_s6, %s2814_s25 }
 0x44d   : > { %2194 = vmatpush3.xpose.msra.mxu0 %v1639_v6  ;;  %2302 = vmatpush3.xpose.msra.mxu1 %v1639_v6  ;;  %v1623_v31 = vld [vmem:[#allocation2 + $0x60] sm:$0xff]  ;;  %v1624_v62 = vld [vmem:[#allocation2 + $0x70] sm:$0xff]  ;;  %v1617_v61 = vld [vmem:[#allocation2 + $0x8] sm:$0xff] }
 0x44e   : > { %2195 = vmatprep.subr.mxu0 %v1654_v3  ;;  %2287 = vmatprep.subr.mxu1 %v1654_v3  ;;  %v1625_v58 = vld [vmem:[#allocation2 + $0x78] sm:$0xff]  ;;  %v1618_v48 = vld [vmem:[#allocation2 + $0x48] sm:$0xff]  ;;  %v1820_v10 = vld [vmem:[%s481_s0] sm:$0x3]  ;;  %p2823_p11 = por %p2822_p9, %p2821_p2 }
 0x44f   : > { %v1626_v5 = vld [vmem:[#allocation2 + $0x28] sm:$0xff]  ;;  %v3824_v26 = vrot.slane %v1820_v10, %v1824_v9  ;;  %v3826_v14 = vrot.slane %v1820_v10, %v1828_v34 }
 0x450   : > { %p2824_p4 = pnand %p2823_p11, %p2817_p6 }
 0x451   : > { %2196 = vmatpush3.xpose.msra.mxu0 %v1638_v45  ;;  %2303 = vmatpush3.xpose.msra.mxu1 %v1638_v45 }
 0x452   : > { %2197 = vmatprep.subr.mxu0 %v1653_v60  ;;  %2288 = vmatprep.subr.mxu1 %v1653_v60 }
 0x455   : > { %2198 = vmatpush3.xpose.msra.mxu0 %v1637_v37  ;;  %2304 = vmatpush3.xpose.msra.mxu1 %v1637_v37 }
 0x456   : > { %2199 = vmatprep.subr.mxu0 %v1652_v23  ;;  %2289 = vmatprep.subr.mxu1 %v1652_v23 }
 0x459   : > { %2200 = vmatpush3.xpose.msra.mxu0 %v1636_v24  ;;  %2305 = vmatpush3.xpose.msra.mxu1 %v1636_v24 }
 0x45a   : > { %2201 = vmatprep.subr.mxu0 %v1651_v39  ;;  %2290 = vmatprep.subr.mxu1 %v1651_v39 }
 0x45d   : > { %2202 = vmatpush3.xpose.msra.mxu0 %v1635_v28  ;;  %2306 = vmatpush3.xpose.msra.mxu1 %v1635_v28 }
 0x45e   : > { %2203 = vmatprep.subr.mxu0 %v1650_v55  ;;  %2291 = vmatprep.subr.mxu1 %v1650_v55 }
 0x461   : > { %2204 = vmatpush3.xpose.msra.mxu0 %v1634_v29  ;;  %2307 = vmatpush3.xpose.msra.mxu1 %v1634_v29 }
 0x462   : > { %2205 = vmatprep.subr.mxu0 %v1649_v30  ;;  %2292 = vmatprep.subr.mxu1 %v1649_v30 }
 0x465   : > { %2206 = vmatpush3.xpose.msra.mxu0 %v1633_v63  ;;  %2308 = vmatpush3.xpose.msra.mxu1 %v1633_v63 }
 0x466   : > { %2207 = vmatprep.subr.mxu0 %v1648_v41  ;;  %2293 = vmatprep.subr.mxu1 %v1648_v41 }
 0x469   : > { %2208 = vmatpush3.xpose.msra.mxu0 %v1632_v44  ;;  %2309 = vmatpush3.xpose.msra.mxu1 %v1632_v44 }
 0x46a   : > { %2209 = vmatprep.subr.mxu0 %v1647_v15  ;;  %2294 = vmatprep.subr.mxu1 %v1647_v15 }
 0x46d   : > { %2210 = vmatpush3.xpose.msra.mxu0 %v1631_v47  ;;  %2310 = vmatpush3.xpose.msra.mxu1 %v1631_v47 }
 0x46e   : > { %2211 = vmatprep.subr.mxu0 %v1646_v21  ;;  %2295 = vmatprep.subr.mxu1 %v1646_v21 }
 0x471   : > { %2212 = vmatpush3.xpose.msra.mxu0 %v1630_v1  ;;  %2311 = vmatpush3.xpose.msra.mxu1 %v1630_v1 }
 0x472   : > { %2213 = vmatprep.subr.mxu0 %v1645_v32  ;;  %2296 = vmatprep.subr.mxu1 %v1645_v32 }
 0x475   : > { %2214 = vmatpush3.xpose.msra.mxu0 %v1629_v25  ;;  %2312 = vmatpush3.xpose.msra.mxu1 %v1629_v25 }
 0x476   : > { %2215 = vmatprep.subr.mxu0 %v1644_v11  ;;  %2297 = vmatprep.subr.mxu1 %v1644_v11 }
 0x479   : > { %2216 = vmatpush3.xpose.msra.mxu0 %v1628_v51  ;;  %2313 = vmatpush3.xpose.msra.mxu1 %v1628_v51 }
 0x47a   : > { %2217 = vmatprep.subr.mxu0 %v1643_v52  ;;  %2298 = vmatprep.subr.mxu1 %v1643_v52 }
 0x47d   : > { %2218 = vmatpush3.xpose.msra.mxu0 %v1627_v35  ;;  %2314 = vmatpush3.xpose.msra.mxu1 %v1627_v35 }
 0x480   : > { %2220 = vmatmul.mubr.f32.vlgmr.msra.gmra.mxu0 %v3786_v20  ;;  %2236 = vmatmul.mubr.f32.vlgmr.msra.gmra.mxu1 %v3789_v13 }
 0x481   : > { %2221 = vmatprep.mubr.f32.mxu0 %v1612_v49  ;;  %2237 = vmatprep.mubr.f32.mxu1 %v1620_v22 }
 0x484   : > { %2222 = vmatmul.mubr.f32.gmra.mxu0 %v1612_v49  ;;  %2238 = vmatmul.mubr.f32.gmra.mxu1 %v1620_v22 }
 0x485   : > { %2223 = vmatprep.mubr.f32.mxu0 %v1613_v50  ;;  %2239 = vmatprep.mubr.f32.mxu1 %v1621_v54 }
 0x488   : > { %2224 = vmatmul.mubr.f32.gmra.mxu0 %v1613_v50  ;;  %2240 = vmatmul.mubr.f32.gmra.mxu1 %v1621_v54 }
 0x489   : > { %2225 = vmatprep.mubr.f32.mxu0 %v1614_v36  ;;  %2241 = vmatprep.mubr.f32.mxu1 %v1622_v56 }
 0x48c   : > { %2226 = vmatmul.mubr.f32.gmra.mxu0 %v1614_v36  ;;  %2242 = vmatmul.mubr.f32.gmra.mxu1 %v1622_v56 }
 0x48d   : > { %2227 = vmatprep.mubr.f32.mxu0 %v1615_v53  ;;  %2243 = vmatprep.mubr.f32.mxu1 %v1623_v31 }
 0x490   : > { %2228 = vmatmul.mubr.f32.gmra.mxu0 %v1615_v53  ;;  %2244 = vmatmul.mubr.f32.gmra.mxu1 %v1623_v31 }
 0x491   : > { %2229 = vmatprep.mubr.f32.mxu0 %v1616_v42  ;;  %2245 = vmatprep.mubr.f32.mxu1 %v1624_v62 }
 0x494   : > { %2230 = vmatmul.mubr.f32.gmra.mxu0 %v1616_v42  ;;  %2246 = vmatmul.mubr.f32.gmra.mxu1 %v1624_v62 }
 0x495   : > { %2231 = vmatprep.mubr.f32.mxu0 %v1617_v61  ;;  %2247 = vmatprep.mubr.f32.mxu1 %v1625_v58 }
 0x498   : > { %2232 = vmatmul.mubr.f32.gmra.mxu0 %v1617_v61  ;;  %2248 = vmatmul.mubr.f32.gmra.mxu1 %v1625_v58 }
 0x499   : > { %2233 = vmatprep.mubr.f32.mxu0 %v1618_v48  ;;  %2249 = vmatprep.mubr.f32.mxu1 %v1626_v5 }
 0x49c   : > { %2234 = vmatmul.mubr.f32.gmra.mxu0 %v1618_v48  ;;  %2250 = vmatmul.mubr.f32.gmra.mxu1 %v1626_v5 }
 0x540   : > { %v1725_v27 = vpop.f32.mrf.mxu0  ;;  %v1773_v59 = vpop.f32.mrf.mxu1 }
 0x541   : > { %v1832_v38 = vmul.f32 %v3824_v26, %v1725_v27  ;;  %v1848_v17 = vmul.f32 %v3824_v26, %v1773_v59 }
 0x542   : > { %v1727_v16 = vpop.f32.mrf.mxu0  ;;  %v1775_v18 = vpop.f32.mrf.mxu1 }
 0x543   : > { %1864 = vst [vmem:[%s3328_s12] sm:$0xff] %v1832_v38  ;;  %1880 = vst [vmem:[%s3328_s12 + $0x80] sm:$0xff] %v1848_v17  ;;  %v1833_v2 = vmul.f32 %v3826_v14, %v1727_v16  ;;  %v1849_v0 = vmul.f32 %v3826_v14, %v1775_v18 }
 0x544   : > { %v1731_v19 = vpop.f32.mrf.mxu0  ;;  %v1779_v43 = vpop.f32.mrf.mxu1 }
 0x545   : > { %1865 = vst [vmem:[%s3328_s12 + $0x8] sm:$0xff] %v1833_v2  ;;  %1881 = vst [vmem:[%s3328_s12 + $0x88] sm:$0xff] %v1849_v0  ;;  %v1834_v57 = vmul.f32 %v3824_v26, %v1731_v19  ;;  %v1850_v4 = vmul.f32 %v3824_v26, %v1779_v43 }
 0x546   : > { %v1733_v33 = vpop.f32.mrf.mxu0  ;;  %v1781_v12 = vpop.f32.mrf.mxu1 }
 0x547   : > { %1866 = vst [vmem:[%s3328_s12 + $0x10] sm:$0xff] %v1834_v57  ;;  %1882 = vst [vmem:[%s3328_s12 + $0x90] sm:$0xff] %v1850_v4  ;;  %v1835_v46 = vmul.f32 %v3826_v14, %v1733_v33  ;;  %v1851_v40 = vmul.f32 %v3826_v14, %v1781_v12 }
 0x548   : > { %v1737_v20 = vpop.f32.mrf.mxu0  ;;  %v1785_v6 = vpop.f32.mrf.mxu1 }
 0x549   : > { %1867 = vst [vmem:[%s3328_s12 + $0x18] sm:$0xff] %v1835_v46  ;;  %1883 = vst [vmem:[%s3328_s12 + $0x98] sm:$0xff] %v1851_v40  ;;  %v1836_v13 = vmul.f32 %v3824_v26, %v1737_v20  ;;  %v1852_v3 = vmul.f32 %v3824_v26, %v1785_v6 }
 0x54a   : > { %v1739_v45 = vpop.f32.mrf.mxu0  ;;  %v1787_v60 = vpop.f32.mrf.mxu1 }
 0x54b   : > { %1868 = vst [vmem:[%s3328_s12 + $0x20] sm:$0xff] %v1836_v13  ;;  %1884 = vst [vmem:[%s3328_s12 + $0xa0] sm:$0xff] %v1852_v3  ;;  %v1837_v37 = vmul.f32 %v3826_v14, %v1739_v45  ;;  %v1853_v23 = vmul.f32 %v3826_v14, %v1787_v60 }
 0x54c   : > { %v1743_v24 = vpop.f32.mrf.mxu0  ;;  %v1791_v39 = vpop.f32.mrf.mxu1 }
 0x54d   : > { %1869 = vst [vmem:[%s3328_s12 + $0x28] sm:$0xff] %v1837_v37  ;;  %1885 = vst [vmem:[%s3328_s12 + $0xa8] sm:$0xff] %v1853_v23  ;;  %v1838_v28 = vmul.f32 %v3824_v26, %v1743_v24  ;;  %v1854_v55 = vmul.f32 %v3824_v26, %v1791_v39 }
 0x54e   : > { %v1745_v29 = vpop.f32.mrf.mxu0  ;;  %v1793_v30 = vpop.f32.mrf.mxu1 }
 0x54f   : > { %1870 = vst [vmem:[%s3328_s12 + $0x30] sm:$0xff] %v1838_v28  ;;  %1886 = vst [vmem:[%s3328_s12 + $0xb0] sm:$0xff] %v1854_v55  ;;  %v1839_v63 = vmul.f32 %v3826_v14, %v1745_v29  ;;  %v1855_v41 = vmul.f32 %v3826_v14, %v1793_v30 }
 0x550   : > { %v1749_v44 = vpop.f32.mrf.mxu0  ;;  %v1797_v15 = vpop.f32.mrf.mxu1 }
 0x551   : > { %1871 = vst [vmem:[%s3328_s12 + $0x38] sm:$0xff] %v1839_v63  ;;  %1887 = vst [vmem:[%s3328_s12 + $0xb8] sm:$0xff] %v1855_v41  ;;  %v1840_v47 = vmul.f32 %v3824_v26, %v1749_v44  ;;  %v1856_v21 = vmul.f32 %v3824_v26, %v1797_v15 }
 0x552   : > { %v1751_v1 = vpop.f32.mrf.mxu0  ;;  %v1799_v32 = vpop.f32.mrf.mxu1 }
 0x553   : > { %1872 = vst [vmem:[%s3328_s12 + $0x40] sm:$0xff] %v1840_v47  ;;  %1888 = vst [vmem:[%s3328_s12 + $0xc0] sm:$0xff] %v1856_v21  ;;  %v1841_v25 = vmul.f32 %v3826_v14, %v1751_v1  ;;  %v1857_v11 = vmul.f32 %v3826_v14, %v1799_v32 }
 0x554   : > { %v1755_v51 = vpop.f32.mrf.mxu0  ;;  %v1803_v52 = vpop.f32.mrf.mxu1 }
 0x555   : > { %1873 = vst [vmem:[%s3328_s12 + $0x48] sm:$0xff] %v1841_v25  ;;  %1889 = vst [vmem:[%s3328_s12 + $0xc8] sm:$0xff] %v1857_v11  ;;  %v1842_v35 = vmul.f32 %v3824_v26, %v1755_v51  ;;  %v1858_v49 = vmul.f32 %v3824_v26, %v1803_v52 }
 0x556   : > { %v1757_v22 = vpop.f32.mrf.mxu0  ;;  %v1805_v50 = vpop.f32.mrf.mxu1 }
 0x557   : > { %1874 = vst [vmem:[%s3328_s12 + $0x50] sm:$0xff] %v1842_v35  ;;  %1890 = vst [vmem:[%s3328_s12 + $0xd0] sm:$0xff] %v1858_v49  ;;  %v1843_v54 = vmul.f32 %v3826_v14, %v1757_v22  ;;  %v1859_v36 = vmul.f32 %v3826_v14, %v1805_v50 }
 0x558   : > { %v1761_v56 = vpop.f32.mrf.mxu0  ;;  %v1809_v53 = vpop.f32.mrf.mxu1 }
 0x559   : > { %1875 = vst [vmem:[%s3328_s12 + $0x58] sm:$0xff] %v1843_v54  ;;  %1891 = vst [vmem:[%s3328_s12 + $0xd8] sm:$0xff] %v1859_v36  ;;  %v1844_v31 = vmul.f32 %v3824_v26, %v1761_v56  ;;  %v1860_v42 = vmul.f32 %v3824_v26, %v1809_v53 }
 0x55a   : > { %v1763_v62 = vpop.f32.mrf.mxu0  ;;  %v1811_v61 = vpop.f32.mrf.mxu1 }
 0x55b   : > { %1876 = vst [vmem:[%s3328_s12 + $0x60] sm:$0xff] %v1844_v31  ;;  %1892 = vst [vmem:[%s3328_s12 + $0xe0] sm:$0xff] %v1860_v42  ;;  %v1845_v58 = vmul.f32 %v3826_v14, %v1763_v62  ;;  %v1861_v48 = vmul.f32 %v3826_v14, %v1811_v61 }
 0x55c   : > { %v1767_v5 = vpop.f32.mrf.mxu0  ;;  %v1815_v7 = vpop.f32.mrf.mxu1 }
 0x55d   : > { %1877 = vst [vmem:[%s3328_s12 + $0x68] sm:$0xff] %v1845_v58  ;;  %1893 = vst [vmem:[%s3328_s12 + $0xe8] sm:$0xff] %v1861_v48  ;;  %v1846_v8 = vmul.f32 %v3824_v26, %v1767_v5  ;;  %v1862_v9 = vmul.f32 %v3824_v26, %v1815_v7 }
 0x55e   : > { %v1769_v10 = vpop.f32.mrf.mxu0  ;;  %v1817_v34 = vpop.f32.mrf.mxu1 }
 0x55f   : > { %1878 = vst [vmem:[%s3328_s12 + $0x70] sm:$0xff] %v1846_v8  ;;  %1894 = vst [vmem:[%s3328_s12 + $0xf0] sm:$0xff] %v1862_v9  ;;  %v1847_v27 = vmul.f32 %v3826_v14, %v1769_v10  ;;  %v1863_v59 = vmul.f32 %v3826_v14, %v1817_v34 }
 0x561   : > { %1879 = vst [vmem:[%s3328_s12 + $0x78] sm:$0xff] %v1847_v27  ;;  %1895 = vst [vmem:[%s3328_s12 + $0xf8] sm:$0xff] %v1863_v59 }
 0x562   : > { %2827 = shalt.err (!%p2824_p4)
}
 0x563   : > { %s2828_s29 = scalar_lea.hbm %s3892_s23, 4096  ;;  %s2832_s26 = scalar_lea.hbm %s4049_s27, 16384 }
 0x564   : > { %p2829_p12 = scmp.ne.s32.totalorder %s3892_s23, %s2828_s29  ;;  %p2833_p3 = scmp.lt.s32.totalorder %s3892_s23, %s4049_s27 }
 0x565   : > { %p2834_p1 = scmp.lt.s32.totalorder %s2832_s26, %s2828_s29 }
 0x566   : > { %p2830_p5 = pnand %p2829_p12, %p4050_p0 }
 0x567   : > { %p2835_p8 = por %p2834_p1, %p2833_p3 }
 0x568   : > { %p2831_p13 = pneg %p2830_p5 }
 0x56a   : > { %p2836_p10 = pnand %p2835_p8, %p2831_p13 }
 0x56c   : > { %2839 = shalt.err (!%p2836_p10)
}
 0x56d   : > { %s2983_s15 = smov 256   ;;  %s2984_s0 = smov 512  }
 0x56e   : > { %s2985_s7 = smov 16  }
 0x56f   : > { %2335 = dma.vmem_to_hbm [thread:$0]  (%p4050_p0), %s3894_s3, 4096, %s3892_s23, %s3904_s21, %s2983_s15, %s2984_s0, %s2985_s7  }
 0x570 PF: > { %p2370_p7 = scmp.ge.s32.totalorder %s2970_s22, 2  ;;  %s1928_s25 = sand.u32 1, %s2918_s30  }
 0x571   : > { %p4051_p6 = scmp.ne.s32.totalorder %s4036_s28, 0  ;;  %s1929_s4 = scalar_lea.sflag [#allocation5], %s1928_s25 }
 0x573   : > { %p2358_p2 = pnand %p2370_p7, %p4051_p6 }
 0x575   : > { %p2359_p9 = pneg %p2358_p2 }
 0x577   : > { %2913 = dma.done.wait (%p2359_p9), %s1929_s4, 4096  }
 0x578   : > { %2915 = vsyncadd (%p2359_p9), %s1929_s4, 4294963200  ;;  %s30_s22 = sadd.s32 1, %s2970_s22   ;;  %s4053_s8 = sld [smem:[#allocation22_spill]] }
 0x579   : > { %p3932_p11 = scmp.ge.s32.totalorder %s30_s22, 6   ;;  %s4054_s28 = sld [smem:[#allocation23_spill]] }
 0x57a   : > { %s4055_s21 = sld [smem:[#allocation24_spill]]  ;;  %s4056_s30 = smov %s2922_s10 }
 0x57b   : > { %s4057_s10 = smov %s2926_s11  ;;  %s4058_s11 = smov %s3261_s2 }
 0x57c   : > { %s4059_s12 = smov %s2934_s13  ;;  %s4060_s13 = smov %s2938_s14 }
 0x57d   : > { %s4061_s14 = smov %s3243_s9  ;;  %s4062_s15 = smov %s2946_s16 }
 0x57e   : > { %s4063_s16 = smov %s2950_s17  ;;  %s4064_s17 = smov %s3258_s19 }
 0x57f   : > { %s4065_s18 = smov %s2962_s20  ;;  %s4066_s19 = smov %s4053_s8 }
 0x580   : > { %s4067_s20 = smov %s4054_s28  ;;  %29 = sbr.rel (!%p3932_p11) target bundleno = 25 (0x19), region = 137 }
 0x585   :  { %1934 = vsyncpa [#allocation4], 1 }
 0x586   :  { %1936 = vsyncpa [#allocation4 + $0x1], 1 }
 0x587   :  { %1937 = vsyncpa [#allocation7], 1 }
 0x588   :  { %1938 = vsyncpa [#allocation10], 1 }
 0x589   :  { %1939 = vsyncpa [#allocation13], 1 }
 0x58a   :  { %1941 = vsyncpa [#allocation13 + $0x1], 1 }
 0x58b   :  { %1942 = vsyncpa [#allocation5], 1 }
 0x58c   :  { %1944 = vsyncpa [#allocation5 + $0x1], 1 }

</bundles_post_ra>
